<compile_context>
chip_gen: v7x
topology: tpu7x:2x2x1
jax: 0.10.0
libtpu: 0.0.40
codegen_flags: <defaults>
</compile_context>

<pallas_src>
import math

import jax
import jax.numpy as jnp
from jax.experimental import pallas as pl
from jax.experimental.pallas import tpu as pltpu

EMBED_DIM = 8
NUM_HEADS = 2
N_QUBITS = 8
D_K = EMBED_DIM // NUM_HEADS
DIM = 2 ** N_QUBITS                       # statevector length (256)


# ----------------------------- Pallas attention ------------------------------

def _attn_kernel(q_ref, k_ref, v_ref, o_ref):
    scale = 1.0 / math.sqrt(D_K)
    q = q_ref[...] * scale                # fold 1/sqrt(d_k) into q once
    k = k_ref[...]
    v = v_ref[...]
    head_outs = []
    for h in range(NUM_HEADS):            # static unroll; heads are lane slices
        sl = slice(h * D_K, (h + 1) * D_K)
        qh, kh, vh = q[:, :, sl], k[:, :, sl], v[:, :, sl]            # (B,S,dk)
        # scores[b,i,j] = sum_d qh[b,i,d]*kh[b,j,d] -- VPU multiply + reduce;
        # a d_k=4 MXU matmul would be <0.1% utilized, so keep it off the MXU.
        s = jnp.sum(qh[:, :, None, :] * kh[:, None, :, :], axis=-1)   # (B,S,S)
        s = s - jnp.max(s, axis=-1, keepdims=True)
        e = jnp.exp(s)
        # approx reciprocal on the EUP (~1e-3 rel err, fine for softmax)
        p = e * pl.reciprocal(jnp.sum(e, axis=-1, keepdims=True), approx=True)
        # out[b,i,d] = sum_j p[b,i,j]*vh[b,j,d] -- VPU multiply + reduce
        head_outs.append(jnp.sum(p[:, :, :, None] * vh[:, None, :, :], axis=2))
    # single lane-dense (B, S, E) store
    o_ref[...] = jnp.concatenate(head_outs, axis=-1).astype(o_ref.dtype)


def pallas_attention(q, k, v):
    """Multi-head softmax(Q K^T / sqrt(d_k)) V for (B, S, E) f32 operands."""
    B, S, E = q.shape
    vmem_spec = pl.BlockSpec(memory_space=pltpu.MemorySpace.VMEM)
    # Total live data is a few KiB: single invocation (no grid), whole arrays in
    # VMEM, no multi-buffering / vmem_limit tweaks -- invocation-overhead
    # minimization dominates at this size on v5e / v6e / v7x alike.
    return pl.pallas_call(
        _attn_kernel,
        out_shape=jax.ShapeDtypeStruct((B, S, E), jnp.float32),
        in_specs=[vmem_spec, vmem_spec, vmem_spec],
        out_specs=vmem_spec,
    )(q, k, v)


# ------------------- exact statevector sim of the QLayer ---------------------
# State stored flat as (real, imag) float32 arrays of shape (B, 2**N_QUBITS).
# Wire w is bit (N_QUBITS-1-w) of the flat index (torchquantum axis ordering).

def _init_state(batch):
    sr = jnp.zeros((batch, DIM), jnp.float32).at[:, 0].set(1.0)   # |0...0>
    si = jnp.zeros((batch, DIM), jnp.float32)
    return sr, si


def _apply_rx(sr, si, wire, theta):
    """RX(theta) on `wire`; theta is a per-batch (B,) vector of angles."""
    B = sr.shape[0]
    lead, trail = 2 ** wire, 2 ** (N_QUBITS - 1 - wire)
    shape = (B, lead, 2, trail)
    vr, vi = sr.reshape(shape), si.reshape(shape)
    pr, pi = jnp.flip(vr, axis=2), jnp.flip(vi, axis=2)   # X|psi> on `wire`
    c = jnp.cos(0.5 * theta)[:, None, None, None]
    s = jnp.sin(0.5 * theta)[:, None, None, None]
    nr = c * vr + s * pi                                  # (c - i s X)(vr + i vi)
    ni = c * vi - s * pr
    return nr.reshape(B, DIM), ni.reshape(B, DIM)


def _apply_cnot(sr, si, control, target):
    B = sr.shape[0]
    a, b = (control, target) if control < target else (target, control)
    shape = (B, 2 ** a, 2, 2 ** (b - a - 1), 2, 2 ** (N_QUBITS - 1 - b))
    ctrl_ax = 2 if control < target else 4
    tgt_ax = 6 - ctrl_ax

    def apply(st):
        v = st.reshape(shape)
        c0 = jax.lax.index_in_dim(v, 0, axis=ctrl_ax, keepdims=True)
        c1 = jax.lax.index_in_dim(v, 1, axis=ctrl_ax, keepdims=True)
        c1 = jnp.flip(c1, axis=tgt_ax)    # X on target within the control=1 block
        return jnp.concatenate([c0, c1], axis=ctrl_ax).reshape(B, DIM)

    return apply(sr), apply(si)


def _z_signs():
    idx = jnp.arange(DIM, dtype=jnp.int32)
    return jnp.stack(
        [1.0 - 2.0 * ((idx >> (N_QUBITS - 1 - w)) & 1).astype(jnp.float32)
         for w in range(N_QUBITS)], axis=0)               # (N_QUBITS, DIM)


def _measure_all_z(sr, si, signs):
    probs = sr * sr + si * si                             # (B, DIM)
    return probs @ signs.T                                # (B, N_QUBITS)


def _run_q_layer_over_seq(sr, si, feats, rx_params):
    """Mirrors `[q_layer(x[:, t, :], dev) for t in range(T)]`: the shared
    device state keeps evolving across timesteps (no reset between calls)."""
    signs = _z_signs()

    def step(carry, feats_t):                             # feats_t: (B, N)
        sr, si = carry
        # encoder RX(x_w) then trainable RX(theta_w) on the same wire: angles add
        ang = feats_t + rx_params[None, :]
        for w in range(N_QUBITS):
            sr, si = _apply_rx(sr, si, w, ang[:, w])
        for w in range(N_QUBITS):                         # CNOT ring
            sr, si = _apply_cnot(sr, si, w, (w + 1) % N_QUBITS)
        return (sr, si), _measure_all_z(sr, si, signs)

    (sr, si), meas = jax.lax.scan(step, (sr, si), jnp.swapaxes(feats, 0, 1))
    # pad_sequence over the list of per-timestep (B, n) tensors -> (B, T, n)
    return sr, si, jnp.swapaxes(meas, 0, 1)


# --------------------------------- forward -----------------------------------

@jax.jit
def multi_head_attention_quantum_forward(x, rx_params):
    B, S, E = x.shape
    assert E == EMBED_DIM, (E, EMBED_DIM)

    sr, si = _init_state(B)                               # dev.reset_states(B)
    # K, Q, V passes share the evolving device state, so run them back-to-back
    # as ONE scan over 3*S timesteps.
    sr, si, kqv = _run_q_layer_over_seq(
        sr, si, jnp.concatenate([x, x, x], axis=1), rx_params)
    K, Q, V = kqv[:, :S], kqv[:, S:2 * S], kqv[:, 2 * S:]  # (B, S, E) each

    concat = pallas_attention(Q, K, V)                     # (B, S, E)

    # final quantum pass over the attended sequence (device state still shared)
    _, _, out = _run_q_layer_over_seq(sr, si, concat, rx_params)
    return out                                             # (B, S, EMBED_DIM)


if __name__ == "__main__":
    key = jax.random.PRNGKey(0)
    k_x, k_theta = jax.random.split(key)

    B, S = 2, 8
    x = jax.random.normal(k_x, (B, S, EMBED_DIM), dtype=jnp.float32)
    # deterministic init of the trainable RX angles (one per wire)
    rx_params = jax.random.uniform(k_theta, (N_QUBITS,), jnp.float32,
                                   minval=-math.pi, maxval=math.pi)

    out = multi_head_attention_quantum_forward(x, rx_params)
    out = jax.block_until_ready(out)
    assert out.shape == (B, S, EMBED_DIM), out.shape
    assert bool(jnp.all(jnp.isfinite(out)))
    print("KERNEL_OK")
</pallas_src>

<mosaic_0001>
module attributes {stable_mosaic.version = 11 : i64} {
  func.func @_attn_kernel(%arg0: memref<2x8x8xf32, #tpu.memory_space<vmem>>, %arg1: memref<2x8x8xf32, #tpu.memory_space<vmem>>, %arg2: memref<2x8x8xf32, #tpu.memory_space<vmem>>, %arg3: memref<2x8x8xf32, #tpu.memory_space<vmem>>) attributes {dimension_semantics = [], scalar_prefetch = 0 : i64, scratch_operands = 0 : i64, tpu.core_type = #tpu.core_type<tc>} {
    %c0 = arith.constant 0 : index
    %c0_0 = arith.constant 0 : index
    %c0_1 = arith.constant 0 : index
    %0 = vector.load %arg0[%c0, %c0_0, %c0_1] : memref<2x8x8xf32, #tpu.memory_space<vmem>>, vector<2x8x8xf32>
    %cst = arith.constant 5.000000e-01 : f32
    %1 = vector.broadcast %cst : f32 to vector<2x8x8xf32>
    %2 = arith.mulf %0, %1 : vector<2x8x8xf32>
    %c0_2 = arith.constant 0 : index
    %c0_3 = arith.constant 0 : index
    %c0_4 = arith.constant 0 : index
    %3 = vector.load %arg1[%c0_2, %c0_3, %c0_4] : memref<2x8x8xf32, #tpu.memory_space<vmem>>, vector<2x8x8xf32>
    %c0_5 = arith.constant 0 : index
    %c0_6 = arith.constant 0 : index
    %c0_7 = arith.constant 0 : index
    %4 = vector.load %arg2[%c0_5, %c0_6, %c0_7] : memref<2x8x8xf32, #tpu.memory_space<vmem>>, vector<2x8x8xf32>
    %5 = vector.extract_strided_slice %2 {offsets = [0, 0, 0], sizes = [2, 8, 4], strides = [1, 1, 1]} : vector<2x8x8xf32> to vector<2x8x4xf32>
    %6 = vector.extract_strided_slice %3 {offsets = [0, 0, 0], sizes = [2, 8, 4], strides = [1, 1, 1]} : vector<2x8x8xf32> to vector<2x8x4xf32>
    %7 = vector.extract_strided_slice %4 {offsets = [0, 0, 0], sizes = [2, 8, 4], strides = [1, 1, 1]} : vector<2x8x8xf32> to vector<2x8x4xf32>
    %8 = vector.shape_cast %5 : vector<2x8x4xf32> to vector<2x8x1x4xf32>
    %9 = vector.shape_cast %6 : vector<2x8x4xf32> to vector<2x1x8x4xf32>
    %10 = vector.broadcast %8 : vector<2x8x1x4xf32> to vector<2x8x8x4xf32>
    %11 = vector.broadcast %9 : vector<2x1x8x4xf32> to vector<2x8x8x4xf32>
    %12 = arith.mulf %10, %11 : vector<2x8x8x4xf32>
    %cst_8 = arith.constant dense<0.000000e+00> : vector<2x8x8xf32>
    %13 = vector.multi_reduction <add>, %12, %cst_8 [3] : vector<2x8x8x4xf32> to vector<2x8x8xf32>
    %cst_9 = arith.constant dense<0xFF800000> : vector<2x8xf32>
    %14 = vector.multi_reduction <maximumf>, %13, %cst_9 [2] : vector<2x8x8xf32> to vector<2x8xf32>
    %15 = vector.shape_cast %14 : vector<2x8xf32> to vector<2x8x1xf32>
    %16 = vector.broadcast %15 : vector<2x8x1xf32> to vector<2x8x8xf32>
    %17 = arith.subf %13, %16 : vector<2x8x8xf32>
    %18 = math.exp %17 : vector<2x8x8xf32>
    %cst_10 = arith.constant dense<0.000000e+00> : vector<2x8xf32>
    %19 = vector.multi_reduction <add>, %18, %cst_10 [2] : vector<2x8x8xf32> to vector<2x8xf32>
    %20 = vector.shape_cast %19 : vector<2x8xf32> to vector<2x8x1xf32>
    %21 = tpu.reciprocal %20 {approx = true} : vector<2x8x1xf32> -> vector<2x8x1xf32>
    %22 = vector.broadcast %21 : vector<2x8x1xf32> to vector<2x8x8xf32>
    %23 = arith.mulf %18, %22 : vector<2x8x8xf32>
    %24 = vector.shape_cast %23 : vector<2x8x8xf32> to vector<2x8x8x1xf32>
    %25 = vector.shape_cast %7 : vector<2x8x4xf32> to vector<2x1x8x4xf32>
    %26 = vector.broadcast %24 : vector<2x8x8x1xf32> to vector<2x8x8x4xf32>
    %27 = vector.broadcast %25 : vector<2x1x8x4xf32> to vector<2x8x8x4xf32>
    %28 = arith.mulf %26, %27 : vector<2x8x8x4xf32>
    %cst_11 = arith.constant dense<0.000000e+00> : vector<2x8x4xf32>
    %29 = vector.multi_reduction <add>, %28, %cst_11 [2] : vector<2x8x8x4xf32> to vector<2x8x4xf32>
    %30 = vector.extract_strided_slice %2 {offsets = [0, 0, 4], sizes = [2, 8, 4], strides = [1, 1, 1]} : vector<2x8x8xf32> to vector<2x8x4xf32>
    %31 = vector.extract_strided_slice %3 {offsets = [0, 0, 4], sizes = [2, 8, 4], strides = [1, 1, 1]} : vector<2x8x8xf32> to vector<2x8x4xf32>
    %32 = vector.extract_strided_slice %4 {offsets = [0, 0, 4], sizes = [2, 8, 4], strides = [1, 1, 1]} : vector<2x8x8xf32> to vector<2x8x4xf32>
    %33 = vector.shape_cast %30 : vector<2x8x4xf32> to vector<2x8x1x4xf32>
    %34 = vector.shape_cast %31 : vector<2x8x4xf32> to vector<2x1x8x4xf32>
    %35 = vector.broadcast %33 : vector<2x8x1x4xf32> to vector<2x8x8x4xf32>
    %36 = vector.broadcast %34 : vector<2x1x8x4xf32> to vector<2x8x8x4xf32>
    %37 = arith.mulf %35, %36 : vector<2x8x8x4xf32>
    %cst_12 = arith.constant dense<0.000000e+00> : vector<2x8x8xf32>
    %38 = vector.multi_reduction <add>, %37, %cst_12 [3] : vector<2x8x8x4xf32> to vector<2x8x8xf32>
    %cst_13 = arith.constant dense<0xFF800000> : vector<2x8xf32>
    %39 = vector.multi_reduction <maximumf>, %38, %cst_13 [2] : vector<2x8x8xf32> to vector<2x8xf32>
    %40 = vector.shape_cast %39 : vector<2x8xf32> to vector<2x8x1xf32>
    %41 = vector.broadcast %40 : vector<2x8x1xf32> to vector<2x8x8xf32>
    %42 = arith.subf %38, %41 : vector<2x8x8xf32>
    %43 = math.exp %42 : vector<2x8x8xf32>
    %cst_14 = arith.constant dense<0.000000e+00> : vector<2x8xf32>
    %44 = vector.multi_reduction <add>, %43, %cst_14 [2] : vector<2x8x8xf32> to vector<2x8xf32>
    %45 = vector.shape_cast %44 : vector<2x8xf32> to vector<2x8x1xf32>
    %46 = tpu.reciprocal %45 {approx = true} : vector<2x8x1xf32> -> vector<2x8x1xf32>
    %47 = vector.broadcast %46 : vector<2x8x1xf32> to vector<2x8x8xf32>
    %48 = arith.mulf %43, %47 : vector<2x8x8xf32>
    %49 = vector.shape_cast %48 : vector<2x8x8xf32> to vector<2x8x8x1xf32>
    %50 = vector.shape_cast %32 : vector<2x8x4xf32> to vector<2x1x8x4xf32>
    %51 = vector.broadcast %49 : vector<2x8x8x1xf32> to vector<2x8x8x4xf32>
    %52 = vector.broadcast %50 : vector<2x1x8x4xf32> to vector<2x8x8x4xf32>
    %53 = arith.mulf %51, %52 : vector<2x8x8x4xf32>
    %cst_15 = arith.constant dense<0.000000e+00> : vector<2x8x4xf32>
    %54 = vector.multi_reduction <add>, %53, %cst_15 [2] : vector<2x8x8x4xf32> to vector<2x8x4xf32>
    %55 = tpu.concatenate %29, %54 in 2 : vector<2x8x4xf32>, vector<2x8x4xf32> -> vector<2x8x8xf32>
    %c0_16 = arith.constant 0 : index
    %c0_17 = arith.constant 0 : index
    %c0_18 = arith.constant 0 : index
    %56 = vector.load %arg3[%c0_16, %c0_17, %c0_18] : memref<2x8x8xf32, #tpu.memory_space<vmem>>, vector<2x8x8xf32>
    tpu.vector_store %arg3[%c0_16, %c0_17, %c0_18], %55 {strides = array<i32>} : memref<2x8x8xf32, #tpu.memory_space<vmem>>, vector<2x8x8xf32>,
    return
  }
}

</mosaic_0001>

<bundles_post_ra>
// kernel: custom-call
= control target key start
LH: loop header
LB: loop body
LE: loop exit
PB: predicated region body
PF: predicated region fallthrough
CT: control target
= control target key end

     0   :  { %s6_s0 = inlined_call_operand.vmem [shape: f32[24,2,8], index: 0, kind: output, shape index: {}]  }

// kernel: custom-call.1
= control target key start
LH: loop header
LB: loop body
LE: loop exit
PB: predicated region body
PF: predicated region fallthrough
CT: control target
= control target key end

     0   :  { %s6_s0 = inlined_call_operand.hbm [shape: f32[8,2,8], index: 0, kind: output, shape index: {}]  }

// kernel: multi_head_attention_quantum_forward.1
= control target key start
LH: loop header
LB: loop body
LE: loop exit
PB: predicated region body
PF: predicated region fallthrough
CT: control target
= control target key end

     0   :  { %v28_v0 = vlaneseq  ;;  %v1919_v2 = vmov 1966171168   ;;  %vm218_vm0 = vcmask 31744   ;;  %vm349_vm1 = vcmask 1041409   ;;  %s2672_s0 = inlined_call_operand.vmem [shape: f32[2,8,8], index: 0, kind: input, shape index: {}]   ;;  %s2673_s1 = inlined_call_operand.vmem [shape: f32[2,8,8], index: 1, kind: input, shape index: {}]   ;;  %s2674_s2 = inlined_call_operand.vmem [shape: f32[2,8,8], index: 2, kind: input, shape index: {}]   ;;  %s2675_s3 = inlined_call_operand.vmem [shape: f32[2,8,8], index: 3, kind: output, shape index: {}]  }
   0x1   :  { %v15_v1 = vld [vmem:[%s2672_s0 + $0x8] sm:$0xff]  ;;  %v26_v3 = vunpack.c.l.s4 %v1919_v2  ;;  %v14_v4 = vld [vmem:[%s2672_s0] sm:$0xff]  ;;  %vm351_vm2 = vcmask 1042434   ;;  %vm353_vm3 = vcmask 1043459   ;;  %vm355_vm4 = vcmask 1044484  }
   0x2   :  { %v17_v5 = vmul.f32 0.5, %v15_v1  ;;  %v1949_v6 = vshrl.u32 %v28_v0, 7  ;;  %v16_v7 = vmul.f32 0.5, %v14_v4  ;;  %v1958_v21 = vld [vmem:[%s2673_s1 + $0x8] sm:$0xff]  ;;  %v18_v22 = vld [vmem:[%s2673_s1] sm:$0xff]  ;;  %s1920_s1 = smov 124  }
   0x3   :  { %v27_v8 = vunpack.c.0.s8 %v26_v3  ;;  %vm357_vm5 = vcmask 1045509   ;;  %vm359_vm6 = vcmask 1046534   ;;  %vm361_vm7 = vcmask 1047559  }
   0x4   :  { %v73_v9 = vcombine.high %v17_v5, %v17_v5  ;;  %v24_v10 = vcombine.high %v16_v7, %v16_v7  ;;  %v1953_v12 = vsub.s32 0, %v1949_v6  ;;  %vm372_vm8 = vcmask 64512  }
   0x5   :  { %v30_v11 = vsub.s32 %v27_v8, %v1949_v6  ;;  %vm1657_vm9 = vcmask 64544  }
   0x7   :  { %v80_v13 = vrot.slane %v17_v5, %v30_v11  ;;  %v31_v14 = vrot.slane %v16_v7, %v30_v11  ;;  %v87_v15 = vrot.slane %v73_v9, %v30_v11  ;;  %v38_v16 = vrot.slane %v24_v10, %v30_v11 }
   0x9   :  { %v96_v17 = vrot.slane %v80_v13, %v30_v11  ;;  %v88_v18 = vcombine.high %v80_v13, %v80_v13  ;;  %v47_v19 = vrot.slane %v31_v14, %v30_v11  ;;  %v39_v20 = vcombine.high %v31_v14, %v31_v14 }
   0xa   :  { %v103_v23 = vrot.slane %v87_v15, %v30_v11  ;;  %v54_v24 = vrot.slane %v38_v16, %v30_v11  ;;  %v89_v39 = vcombine.high %v87_v15, %v87_v15  ;;  %v40_v43 = vcombine.high %v38_v16, %v38_v16 }
   0xb   :  { %v157_v25 = vrot.slane %v96_v17, %v1953_v12  ;;  %v125_v26 = vrot.slane %v47_v19, %v1953_v12  ;;  %v110_v29 = vrot.slane %v88_v18, %v30_v11  ;;  %v61_v30 = vrot.slane %v39_v20, %v30_v11 }
   0xc   :  { %v173_v27 = vrot.slane %v103_v23, %v1953_v12  ;;  %v141_v28 = vrot.slane %v54_v24, %v1953_v12  ;;  %v118_v33 = vcombine.high %v96_v17, %v96_v17  ;;  %v69_v34 = vcombine.high %v47_v19, %v47_v19 }
   0xd   :  { %v1968_v31 = vmul.f32 %v157_v25, %v1958_v21  ;;  %v202_v32 = vmul.f32 %v125_v26, %v18_v22  ;;  %v161_v37 = vrot.slane %v110_v29, %v1953_v12  ;;  %v129_v38 = vrot.slane %v61_v30, %v1953_v12 }
   0xe   :  { %v1971_v35 = vmul.f32 %v173_v27, %v1958_v21  ;;  %v206_v36 = vmul.f32 %v141_v28, %v18_v22  ;;  %v165_v40 = vrot.slane %v118_v33, %v1953_v12  ;;  %v133_v41 = vrot.slane %v69_v34, %v1953_v12 }
   0xf   :  { %999 = vrot.lane.b32.xlu1 %v1968_v31, %s1920_s1  ;;  %983 = vrot.lane.b32.xlu0 %v202_v32, %s1920_s1  ;;  %v120_v42 = vcombine.high %v110_v29, %v110_v29  ;;  %v211_v44 = vmul.f32 %v161_v37, %v1958_v21  ;;  %v203_v45 = vmul.f32 %v129_v38, %v18_v22  ;;  %v219_v9 = vsel %vm218_vm0, %v202_v32, 0.0 }
  0x10   :  { %v71_v46 = vcombine.high %v61_v30, %v61_v30  ;;  %v212_v47 = vmul.f32 %v165_v40, %v1958_v21  ;;  %v204_v48 = vmul.f32 %v133_v41, %v18_v22  ;;  %v117_v49 = vrot.slane %v89_v39, %v30_v11 }
  0x11   :  { %v169_v50 = vrot.slane %v120_v42, %v1953_v12  ;;  %v68_v52 = vrot.slane %v40_v43, %v30_v11  ;;  %v119_v54 = vcombine.high %v103_v23, %v103_v23  ;;  %v70_v55 = vcombine.high %v54_v24, %v54_v24 }
  0x12   :  { %v137_v51 = vrot.slane %v71_v46, %v1953_v12  ;;  %v177_v53 = vrot.slane %v117_v49, %v1953_v12  ;;  %v121_v61 = vcombine.high %v117_v49, %v117_v49  ;;  %v225_v10 = vsel %vm218_vm0, %v204_v48, 0.0 }
  0x13   :  { %1007 = vrot.lane.b32.xlu1 %v1971_v35, %s1920_s1  ;;  %991 = vrot.lane.b32.xlu0 %v206_v36, %s1920_s1  ;;  %v213_v56 = vmul.f32 %v169_v50, %v1958_v21  ;;  %v145_v58 = vrot.slane %v68_v52, %v1953_v12  ;;  %v181_v60 = vrot.slane %v119_v54, %v1953_v12  ;;  %v222_v11 = vsel %vm218_vm0, %v203_v45, 0.0 }
  0x14   :  { %v205_v57 = vmul.f32 %v137_v51, %v18_v22  ;;  %v215_v59 = vmul.f32 %v177_v53, %v1958_v21  ;;  %v149_v63 = vrot.slane %v70_v55, %v1953_v12  ;;  %v72_v1 = vcombine.high %v68_v52, %v68_v52 }
  0x15   :  { %v207_v62 = vmul.f32 %v145_v58, %v18_v22  ;;  %v216_v2 = vmul.f32 %v181_v60, %v1958_v21  ;;  %v185_v5 = vrot.slane %v121_v61, %v1953_v12  ;;  %v231_v14 = vsel %vm218_vm0, %v206_v36, 0.0 }
  0x16   :  { %v208_v3 = vmul.f32 %v149_v63, %v18_v22  ;;  %v153_v4 = vrot.slane %v72_v1, %v1953_v12  ;;  %v228_v13 = vsel %vm218_vm0, %v205_v57, 0.0  ;;  %v243_v18 = vsel %vm218_vm0, %v1968_v31, 0.0 }
  0x17   :  { %1001 = vrot.lane.b32.xlu1 %v211_v44, %s1920_s1  ;;  %985 = vrot.lane.b32.xlu0 %v203_v45, %s1920_s1  ;;  %v217_v8 = vmul.f32 %v185_v5, %v1958_v21  ;;  %v234_v15 = vsel %vm218_vm0, %v207_v62, 0.0  ;;  %v246_v19 = vsel %vm218_vm0, %v211_v44, 0.0  ;;  %v249_v20 = vsel %vm218_vm0, %v212_v47, 0.0 }
  0x18   :  { %v209_v7 = vmul.f32 %v153_v4, %v18_v22  ;;  %v237_v16 = vsel %vm218_vm0, %v208_v3, 0.0  ;;  %v252_v21 = vsel %vm218_vm0, %v213_v56, 0.0  ;;  %v255_v22 = vsel %vm218_vm0, %v1971_v35, 0.0 }
  0x19   :  { %v258_v23 = vsel %vm218_vm0, %v215_v59, 0.0  ;;  %v261_v24 = vsel %vm218_vm0, %v216_v2, 0.0  ;;  %v264_v25 = vsel %vm218_vm0, %v217_v8, 0.0  ;;  %v284_v58 = vand.u32 127, %v28_v0 }
  0x1a   :  { %v240_v17 = vsel %vm218_vm0, %v209_v7, 0.0 }
  0x1b   :  { %1003 = vrot.lane.b32.xlu1 %v212_v47, %s1920_s1  ;;  %987 = vrot.lane.b32.xlu0 %v204_v48, %s1920_s1 }
  0x1f   :  { %1005 = vrot.lane.b32.xlu1 %v213_v56, %s1920_s1  ;;  %989 = vrot.lane.b32.xlu0 %v205_v57, %s1920_s1 }
  0x23   :  { %1009 = vrot.lane.b32.xlu1 %v215_v59, %s1920_s1  ;;  %993 = vrot.lane.b32.xlu0 %v207_v62, %s1920_s1  ;;  %v2045_v59 = vsub.s32 %v284_v58, %v1949_v6 }
  0x27   :  { %1011 = vrot.lane.b32.xlu1 %v216_v2, %s1920_s1  ;;  %995 = vrot.lane.b32.xlu0 %v208_v3, %s1920_s1 }
  0x2b   :  { %997 = vrot.lane.b32.xlu0 %v209_v7, %s1920_s1  ;;  %1013 = vrot.lane.b32.xlu1 %v217_v8, %s1920_s1 }
  0x4a   :  { %220 = vadd.xlane.f32.xlu0 %v219_v9 }
  0x4e   :  { %226 = vadd.xlane.f32.xlu0 %v225_v10 }
  0x4f   :  { %223 = vadd.xlane.f32.xlu1 %v222_v11 }
  0x52   :  { %229 = vadd.xlane.f32.xlu0 %v228_v13 }
  0x53   :  { %232 = vadd.xlane.f32.xlu1 %v231_v14 }
  0x56   :  { %235 = vadd.xlane.f32.xlu0 %v234_v15 }
  0x57   :  { %238 = vadd.xlane.f32.xlu1 %v237_v16 }
  0x5a   :  { %241 = vadd.xlane.f32.xlu0 %v240_v17 }
  0x5b   :  { %244 = vadd.xlane.f32.xlu1 %v243_v18 }
  0x5e   :  { %247 = vadd.xlane.f32.xlu0 %v246_v19 }
  0x5f   :  { %250 = vadd.xlane.f32.xlu1 %v249_v20 }
  0x62   :  { %253 = vadd.xlane.f32.xlu0 %v252_v21 }
  0x63   :  { %256 = vadd.xlane.f32.xlu1 %v255_v22 }
  0x66   :  { %259 = vadd.xlane.f32.xlu0 %v258_v23 }
  0x67   :  { %262 = vadd.xlane.f32.xlu1 %v261_v24 }
  0x6a   :  { %265 = vadd.xlane.f32.xlu0 %v264_v25 }
  0x81   :  { %v1000_v26 = vpop.permute.xlu1 %999  ;;  %v984_v27 = vpop.permute.xlu0 %983 }
  0x82   :  { %v1031_v28 = vsel %vm218_vm0, %v984_v27, 0.0  ;;  %v1055_v31 = vsel %vm218_vm0, %v1000_v26, 0.0 }
  0x83   :  { %1032 = vadd.xlane.f32.xlu1 %v1031_v28 }
  0x85   :  { %v1008_v29 = vpop.permute.xlu1 %1007  ;;  %v992_v30 = vpop.permute.xlu0 %991 }
  0x86   :  { %v1043_v32 = vsel %vm218_vm0, %v992_v30, 0.0  ;;  %v1067_v35 = vsel %vm218_vm0, %v1008_v29, 0.0 }
  0x87   :  { %1056 = vadd.xlane.f32.xlu1 %v1055_v31  ;;  %1044 = vadd.xlane.f32.xlu0 %v1043_v32 }
  0x89   :  { %v1002_v33 = vpop.permute.xlu1 %1001  ;;  %v986_v34 = vpop.permute.xlu0 %985 }
  0x8a   :  { %v1034_v36 = vsel %vm218_vm0, %v986_v34, 0.0  ;;  %v1058_v40 = vsel %vm218_vm0, %v1002_v33, 0.0 }
  0x8b   :  { %1068 = vadd.xlane.f32.xlu1 %v1067_v35  ;;  %1035 = vadd.xlane.f32.xlu0 %v1034_v36 }
  0x8d   :  { %v1004_v37 = vpop.permute.xlu1 %1003  ;;  %v988_v38 = vpop.permute.xlu0 %987 }
  0x8e   :  { %v1061_v39 = vsel %vm218_vm0, %v1004_v37, 0.0  ;;  %v1037_v43 = vsel %vm218_vm0, %v988_v38, 0.0 }
  0x8f   :  { %1062 = vadd.xlane.f32.xlu1 %v1061_v39  ;;  %1059 = vadd.xlane.f32.xlu0 %v1058_v40 }
  0x91   :  { %v1006_v41 = vpop.permute.xlu1 %1005  ;;  %v990_v42 = vpop.permute.xlu0 %989 }
  0x92   :  { %v1040_v54 = vsel %vm218_vm0, %v990_v42, 0.0  ;;  %v1064_v55 = vsel %vm218_vm0, %v1006_v41, 0.0 }
  0x93   :  { %1038 = vadd.xlane.f32.xlu0 %v1037_v43 }
  0x95   :  { %v1010_v44 = vpop.permute.xlu1 %1009  ;;  %v994_v45 = vpop.permute.xlu0 %993 }
  0x96   :  { %v1046_v46 = vsel %vm218_vm0, %v994_v45, 0.0  ;;  %v1070_v47 = vsel %vm218_vm0, %v1010_v44, 0.0 }
  0x97   :  { %1047 = vadd.xlane.f32.xlu1 %v1046_v46  ;;  %1071 = vadd.xlane.f32.xlu0 %v1070_v47  ;;  %v1921_v47 = vmov 0  }
  0x98   :  { %1846 = vset.pattern.permute.xlu0 %v1921_v47  ;;  %1845 = vset.pattern.permute.xlu1 %v1921_v47 }
  0x99   :  { %v1012_v48 = vpop.permute.xlu1 %1011  ;;  %v996_v49 = vpop.permute.xlu0 %995 }
  0x9a   :  { %v1073_v50 = vsel %vm218_vm0, %v1012_v48, 0.0  ;;  %v1049_v51 = vsel %vm218_vm0, %v996_v49, 0.0 }
  0x9b   :  { %1074 = vadd.xlane.f32.xlu1 %v1073_v50  ;;  %1050 = vadd.xlane.f32.xlu0 %v1049_v51 }
  0x9d   :  { %v1014_v52 = vpop.permute.xlu1 %1013  ;;  %v998_v53 = vpop.permute.xlu0 %997 }
  0x9e   :  { %v1052_v56 = vsel %vm218_vm0, %v998_v53, 0.0  ;;  %v1076_v57 = vsel %vm218_vm0, %v1014_v52, 0.0 }
  0x9f   :  { %1041 = vadd.xlane.f32.xlu1 %v1040_v54  ;;  %1065 = vadd.xlane.f32.xlu0 %v1064_v55 }
  0xa3   :  { %1053 = vadd.xlane.f32.xlu1 %v1052_v56  ;;  %1077 = vadd.xlane.f32.xlu0 %v1076_v57 }
  0xd7   :  { %v2047_v60 = vpop.xlane.xlu0 %220 }
  0xd8   :  { %v288_v61 = vrot.slane %v2047_v60, %v2045_v59 }
  0xdb   :  { %v2051_v62 = vpop.xlane.xlu0 %226 }
  0xdc   :  { %v296_v63 = vrot.slane %v2051_v62, %v2045_v59  ;;  %v2055_v1 = vpop.xlane.xlu1 %223 }
  0xdd   :  { %v292_v2 = vrot.slane %v2055_v1, %v2045_v59 }
  0xdf   :  { %v350_v0 = vsel %vm349_vm1, %v292_v2, %v288_v61  ;;  %v2060_v3 = vpop.xlane.xlu0 %229 }
  0xe0   :  { %v352_v4 = vsel %vm351_vm2, %v296_v63, %v350_v0  ;;  %v300_v5 = vrot.slane %v2060_v3, %v2045_v59  ;;  %v2065_v7 = vpop.xlane.xlu1 %232 }
  0xe1   :  { %v304_v8 = vrot.slane %v2065_v7, %v2045_v59 }
  0xe2   :  { %v354_v9 = vsel %vm353_vm3, %v300_v5, %v352_v4 }
  0xe3   :  { %v356_v10 = vsel %vm355_vm4, %v304_v8, %v354_v9  ;;  %v2071_v11 = vpop.xlane.xlu0 %235 }
  0xe4   :  { %v308_v13 = vrot.slane %v2071_v11, %v2045_v59  ;;  %v2075_v14 = vpop.xlane.xlu1 %238 }
  0xe5   :  { %v312_v15 = vrot.slane %v2075_v14, %v2045_v59 }
  0xe6   :  { %v358_v16 = vsel %vm357_vm5, %v308_v13, %v356_v10 }
  0xe7   :  { %v2080_v17 = vpop.xlane.xlu0 %241  ;;  %v360_v18 = vsel %vm359_vm6, %v312_v15, %v358_v16 }
  0xe8   :  { %v316_v19 = vrot.slane %v2080_v17, %v2045_v59  ;;  %v2085_v20 = vpop.xlane.xlu1 %244 }
  0xe9   :  { %v320_v21 = vrot.slane %v2085_v20, %v2045_v59 }
  0xea   :  { %v362_v22 = vsel %vm361_vm7, %v316_v19, %v360_v18 }
  0xeb   :  { %v2090_v23 = vpop.xlane.xlu0 %247  ;;  %v373_v24 = vsel %vm372_vm8, %v362_v22, -inf }
  0xec   :  { %v324_v25 = vrot.slane %v2090_v23, %v2045_v59  ;;  %374 = vmax.xlane.f32.xlu1 %v373_v24  ;;  %v2095_v26 = vpop.xlane.xlu1 %250 }
  0xed   :  { %v328_v27 = vrot.slane %v2095_v26, %v2045_v59 }
  0xee   :  { %v363_v28 = vsel %vm349_vm1, %v324_v25, %v320_v21 }
  0xef   :  { %v364_v29 = vsel %vm351_vm2, %v328_v27, %v363_v28  ;;  %v2101_v30 = vpop.xlane.xlu0 %253 }
  0xf0   :  { %v332_v31 = vrot.slane %v2101_v30, %v2045_v59  ;;  %v2105_v32 = vpop.xlane.xlu1 %256 }
  0xf1   :  { %v336_v33 = vrot.slane %v2105_v32, %v2045_v59 }
  0xf2   :  { %v365_v34 = vsel %vm353_vm3, %v332_v31, %v364_v29 }
  0xf3   :  { %v366_v35 = vsel %vm355_vm4, %v336_v33, %v365_v34  ;;  %v2111_v36 = vpop.xlane.xlu0 %259 }
  0xf4   :  { %v340_v37 = vrot.slane %v2111_v36, %v2045_v59  ;;  %v2115_v38 = vpop.xlane.xlu1 %262 }
  0xf5   :  { %v344_v39 = vrot.slane %v2115_v38, %v2045_v59 }
  0xf6   :  { %v367_v40 = vsel %vm357_vm5, %v340_v37, %v366_v35 }
  0xf7   :  { %v2120_v41 = vpop.xlane.xlu0 %265  ;;  %v368_v42 = vsel %vm359_vm6, %v344_v39, %v367_v40 }
  0xf8   :  { %v348_v43 = vrot.slane %v2120_v41, %v2045_v59 }
  0xfa   :  { %v369_v44 = vsel %vm361_vm7, %v348_v43, %v368_v42 }
  0xfb   :  { %v376_v45 = vsel %vm372_vm8, %v369_v44, -inf }
  0xfc   :  { %377 = vmax.xlane.f32.xlu0 %v376_v45 }
 0x110   :  { %v2127_v46 = vpop.xlane.xlu1 %1032 }
 0x111   :  { %v1098_v5 = vrot.slane %v2127_v46, %v2045_v59 }
 0x114   :  { %v2129_v48 = vpop.xlane.xlu1 %1056  ;;  %v2131_v49 = vpop.xlane.xlu0 %1044 }
 0x115   :  { %v1130_v63 = vrot.slane %v2129_v48, %v2045_v59  ;;  %v1114_v18 = vrot.slane %v2131_v49, %v2045_v59 }
 0x118   :  { %v2133_v50 = vpop.xlane.xlu0 %1035  ;;  %v2135_v51 = vpop.xlane.xlu1 %1068 }
 0x119   :  { %v1102_v2 = vrot.slane %v2133_v50, %v2045_v59  ;;  %v1146_v19 = vrot.slane %v2135_v51, %v2045_v59 }
 0x11b   :  { %v1159_v13 = vsel %vm349_vm1, %v1102_v2, %v1098_v5  ;;  %v2214_v5 = vsub.s32 5, %v1949_v6 }
 0x11c   :  { %v2137_v52 = vpop.xlane.xlu0 %1059  ;;  %v2139_v53 = vpop.xlane.xlu1 %1062 }
 0x11d   :  { %v1134_v57 = vrot.slane %v2137_v52, %v2045_v59  ;;  %v1138_v0 = vrot.slane %v2139_v53, %v2045_v59 }
 0x11f   :  { %v1166_v8 = vsel %vm349_vm1, %v1134_v57, %v1130_v63 }
 0x120   :  { %v2141_v54 = vpop.xlane.xlu0 %1038  ;;  %v1167_v22 = vsel %vm351_vm2, %v1138_v0, %v1166_v8  ;;  %v2208_v0 = vsub.s32 1, %v1949_v6  ;;  %v2217_v8 = vsub.s32 3, %v1949_v6 }
 0x121   :  { %v1106_v4 = vrot.slane %v2141_v54, %v2045_v59 }
 0x123   :  { %v1160_v21 = vsel %vm351_vm2, %v1106_v4, %v1159_v13  ;;  %v2211_v4 = vsub.s32 2, %v1949_v6 }
 0x124   :  { %v2143_v55 = vpop.xlane.xlu1 %1047  ;;  %v2145_v56 = vpop.xlane.xlu0 %1071 }
 0x125   :  { %v1118_v24 = vrot.slane %v2143_v55, %v2045_v59  ;;  %v1150_v25 = vrot.slane %v2145_v56, %v2045_v59 }
 0x128   :  { %v2149_v58 = vpop.xlane.xlu1 %1074  ;;  %v2151_v61 = vpop.xlane.xlu0 %1050 }
 0x129   :  { %v1154_v29 = vrot.slane %v2149_v58, %v2045_v59  ;;  %v1122_v31 = vrot.slane %v2151_v61, %v2045_v59 }
 0x12c   :  { %v2164_v9 = vpop.xlane.xlu1 %1041  ;;  %v2166_v10 = vpop.xlane.xlu0 %1065 }
 0x12d   :  { %v1110_v15 = vrot.slane %v2164_v9, %v2045_v59  ;;  %v1142_v16 = vrot.slane %v2166_v10, %v2045_v59 }
 0x12f   :  { %v1161_v27 = vsel %vm353_vm3, %v1110_v15, %v1160_v21  ;;  %v1168_v28 = vsel %vm353_vm3, %v1142_v16, %v1167_v22 }
 0x130   :  { %v2189_v33 = vpop.xlane.xlu1 %1053  ;;  %v2191_v34 = vpop.xlane.xlu0 %1077  ;;  %v1162_v35 = vsel %vm355_vm4, %v1114_v18, %v1161_v27  ;;  %v1169_v37 = vsel %vm355_vm4, %v1146_v19, %v1168_v28  ;;  %v2223_v19 = vsub.s32 4, %v1949_v6 }
 0x131   :  { %v1126_v39 = vrot.slane %v2189_v33, %v2045_v59  ;;  %v1158_v40 = vrot.slane %v2191_v34, %v2045_v59  ;;  %v1163_v42 = vsel %vm357_vm5, %v1118_v24, %v1162_v35  ;;  %v1170_v43 = vsel %vm357_vm5, %v1150_v25, %v1169_v37 }
 0x132   :  { %v1164_v44 = vsel %vm359_vm6, %v1122_v31, %v1163_v42  ;;  %v1171_v45 = vsel %vm359_vm6, %v1154_v29, %v1170_v43  ;;  %v2232_v35 = vsub.s32 6, %v1949_v6 }
 0x133   :  { %v1165_v47 = vsel %vm361_vm7, %v1126_v39, %v1164_v44  ;;  %v1172_v57 = vsel %vm361_vm7, %v1158_v40, %v1171_v45 }
 0x134   :  { %v1175_v63 = vsel %vm372_vm8, %v1165_v47, -inf  ;;  %v1178_v2 = vsel %vm372_vm8, %v1172_v57, -inf }
 0x135   :  { %1176 = vmax.xlane.f32.xlu1 %v1175_v63  ;;  %1179 = vmax.xlane.f32.xlu0 %v1178_v2 }
 0x179   :  { %v375_v13 = vpop.xlane.xlu1 %374 }
 0x17a   :  { %v384_v15 = vrot.slane %v375_v13, %v1953_v12  ;;  %v388_v16 = vrot.slane %v375_v13, %v2208_v0  ;;  %v392_v18 = vrot.slane %v375_v13, %v2211_v4  ;;  %v404_v21 = vrot.slane %v375_v13, %v2214_v5 }
 0x17b   :  { %v396_v22 = vrot.slane %v375_v13, %v2217_v8  ;;  %v400_v37 = vrot.slane %v375_v13, %v2223_v19 }
 0x17c   :  { %v461_v24 = vsub.f32 %v2047_v60, %v384_v15  ;;  %v462_v25 = vsub.f32 %v2055_v1, %v388_v16  ;;  %v463_v27 = vsub.f32 %v2051_v62, %v392_v18  ;;  %v466_v28 = vsub.f32 %v2071_v11, %v404_v21 }
 0x17d   :  { %v464_v39 = vsub.f32 %v2060_v3, %v396_v22  ;;  %v2237_v60 = vsub.s32 7, %v1949_v6  ;;  %v408_v62 = vrot.slane %v375_v13, %v2232_v35  ;;  %v465_v1 = vsub.f32 %v2065_v7, %v400_v37 }
 0x17e   :  { %v477_v29 = vmul.f32 1.442695, %v461_v24  ;;  %v479_v31 = vmul.f32 1.442695, %v462_v25  ;;  %v481_v40 = vmul.f32 1.442695, %v463_v27 }
 0x17f   :  { %v487_v42 = vmul.f32 1.442695, %v466_v28  ;;  %v483_v11 = vmul.f32 1.442695, %v464_v39  ;;  %v412_v43 = vrot.slane %v375_v13, %v2237_v60  ;;  %v467_v44 = vsub.f32 %v2075_v14, %v408_v62 }
 0x180   :  { %1847 = vpow2.f32 %v477_v29  ;;  %v485_v3 = vmul.f32 1.442695, %v465_v1 }
 0x181   :  { %1849 = vpow2.f32 %v479_v31  ;;  %v468_v6 = vsub.f32 %v2080_v17, %v412_v43  ;;  %v489_v2 = vmul.f32 1.442695, %v467_v44 }
 0x182   :  { %1851 = vpow2.f32 %v481_v40 }
 0x183   :  { %1853 = vpow2.f32 %v487_v42  ;;  %v491_v18 = vmul.f32 1.442695, %v468_v6 }
 0x184   :  { %1855 = vpow2.f32 %v483_v11 }
 0x185   :  { %1857 = vpow2.f32 %v485_v3 }
 0x186   :  { %1859 = vpow2.f32 %v489_v2 }
 0x187   :  { %1861 = vpow2.f32 %v491_v18 }
 0x189   :  { %v378_v45 = vpop.xlane.xlu0 %377 }
 0x18a   :  { %v2243_v47 = vpop.eup %1847  ;;  %v416_v63 = vrot.slane %v378_v45, %v1953_v12  ;;  %v432_v7 = vrot.slane %v378_v45, %v2223_v19  ;;  %v440_v13 = vrot.slane %v378_v45, %v2232_v35  ;;  %v420_v21 = vrot.slane %v378_v45, %v2208_v0 }
 0x18b   :  { %v2245_v57 = vpop.eup %1849  ;;  %526 = vperm.xlu1 %1845, %v2243_v47   ;;  %v424_v27 = vrot.slane %v378_v45, %v2211_v4  ;;  %v436_v40 = vrot.slane %v378_v45, %v2214_v5 }
 0x18c   :  { %529 = vperm.xlu0 %1846, %v2245_v57   ;;  %v473_v14 = vsub.f32 %v2105_v32, %v432_v7  ;;  %v2254_v15 = vpop.eup %1851  ;;  %v469_v17 = vsub.f32 %v2085_v20, %v416_v63  ;;  %v475_v22 = vsub.f32 %v2115_v38, %v440_v13  ;;  %v470_v20 = vsub.f32 %v2090_v23, %v420_v21 }
 0x18d   :  { %v2256_v16 = vpop.eup %1853  ;;  %v428_v38 = vrot.slane %v378_v45, %v2217_v8  ;;  %v471_v31 = vsub.f32 %v2095_v26, %v424_v27  ;;  %v444_v26 = vrot.slane %v378_v45, %v2237_v60  ;;  %v474_v11 = vsub.f32 %v2111_v36, %v436_v40 }
 0x18e   :  { %v501_v24 = vmul.f32 1.442695, %v473_v14  ;;  %v2263_v25 = vpop.eup %1855  ;;  %v493_v32 = vmul.f32 1.442695, %v469_v17  ;;  %v505_v28 = vmul.f32 1.442695, %v475_v22 }
 0x18f   :  { %532 = vperm.xlu1 %1845, %v2254_v15   ;;  %v2268_v29 = vpop.eup %1857  ;;  %v495_v37 = vmul.f32 1.442695, %v470_v20  ;;  %v472_v23 = vsub.f32 %v2101_v30, %v428_v38  ;;  %v497_v42 = vmul.f32 1.442695, %v471_v31  ;;  %v476_v30 = vsub.f32 %v2120_v41, %v444_v26 }
 0x190   :  { %541 = vperm.xlu0 %1846, %v2256_v16   ;;  %1863 = vpow2.f32 %v501_v24  ;;  %v2273_v39 = vpop.eup %1859  ;;  %v503_v6 = vmul.f32 1.442695, %v474_v11 }
 0x191   :  { %1865 = vpow2.f32 %v493_v32  ;;  %v2278_v62 = vpop.eup %1861  ;;  %v499_v43 = vmul.f32 1.442695, %v472_v23  ;;  %v507_v36 = vmul.f32 1.442695, %v476_v30 }
 0x192   :  { %1867 = vpow2.f32 %v505_v28 }
 0x193   :  { %535 = vperm.xlu1 %1845, %v2263_v25   ;;  %1869 = vpow2.f32 %v495_v37 }
 0x194   :  { %1871 = vpow2.f32 %v497_v42 }
 0x195   :  { %1873 = vpow2.f32 %v499_v43 }
 0x196   :  { %1875 = vpow2.f32 %v503_v6 }
 0x197   :  { %538 = vperm.xlu1 %1845, %v2268_v29   ;;  %1877 = vpow2.f32 %v507_v36 }
 0x19a   :  { %v2280_v1 = vpop.eup %1863 }
 0x19b   :  { %544 = vperm.xlu1 %1845, %v2273_v39   ;;  %562 = vperm.xlu0 %1846, %v2280_v1   ;;  %v2286_v44 = vpop.eup %1865 }
 0x19c   :  { %v2288_v3 = vpop.eup %1867 }
 0x19d   :  { %v2293_v63 = vpop.eup %1869 }
 0x19e   :  { %v2296_v45 = vpop.eup %1871 }
 0x19f   :  { %547 = vperm.xlu1 %1845, %v2278_v62   ;;  %568 = vperm.xlu0 %1846, %v2288_v3   ;;  %v2299_v7 = vpop.eup %1873 }
 0x1a0   :  { %v2302_v2 = vpop.eup %1875 }
 0x1a1   :  { %v2305_v41 = vpop.eup %1877 }
 0x1a3   :  { %550 = vperm.xlu1 %1845, %v2286_v44  }
 0x1a7   :  { %553 = vperm.xlu1 %1845, %v2293_v63  }
 0x1ab   :  { %556 = vperm.xlu1 %1845, %v2296_v45  }
 0x1af   :  { %559 = vperm.xlu1 %1845, %v2299_v7  }
 0x1b3   :  { %565 = vperm.xlu1 %1845, %v2302_v2  }
 0x1b7   :  { %571 = vperm.xlu1 %1845, %v2305_v41  }
 0x1c2   :  { %v2308_v13 = vpop.xlane.xlu1 %1176  ;;  %v2314_v17 = vpop.xlane.xlu0 %1179 }
 0x1c3   :  { %v1186_v14 = vrot.slane %v2308_v13, %v1953_v12  ;;  %v1190_v18 = vrot.slane %v2308_v13, %v2208_v0  ;;  %v1218_v27 = vrot.slane %v2314_v17, %v1953_v12  ;;  %v1222_v20 = vrot.slane %v2314_v17, %v2208_v0 }
 0x1c4   :  { %v1194_v28 = vrot.slane %v2308_v13, %v2211_v4  ;;  %v1226_v38 = vrot.slane %v2314_v17, %v2211_v4  ;;  %v1198_v31 = vrot.slane %v2308_v13, %v2217_v8  ;;  %v1230_v40 = vrot.slane %v2314_v17, %v2217_v8 }
 0x1c5   :  { %v1263_v21 = vsub.f32 %v2127_v46, %v1186_v14  ;;  %v1264_v22 = vsub.f32 %v2133_v50, %v1190_v18  ;;  %v1271_v46 = vsub.f32 %v2129_v48, %v1218_v27  ;;  %v1272_v50 = vsub.f32 %v2137_v52, %v1222_v20 }
 0x1c6   :  { %v1265_v37 = vsub.f32 %v2141_v54, %v1194_v28  ;;  %v1273_v23 = vsub.f32 %v2139_v53, %v1226_v38  ;;  %v1202_v11 = vrot.slane %v2308_v13, %v2223_v19  ;;  %v1266_v43 = vsub.f32 %v2164_v9, %v1198_v31 }
 0x1c7   :  { %v1279_v24 = vmul.f32 1.442695, %v1263_v21  ;;  %v1281_v32 = vmul.f32 1.442695, %v1264_v22  ;;  %v1295_v42 = vmul.f32 1.442695, %v1271_v46  ;;  %v1234_v52 = vrot.slane %v2314_v17, %v2223_v19 }
 0x1c8   :  { %v1297_v26 = vmul.f32 1.442695, %v1272_v50  ;;  %v1283_v48 = vmul.f32 1.442695, %v1265_v37  ;;  %v1274_v30 = vsub.f32 %v2166_v10, %v1230_v40  ;;  %v1299_v54 = vmul.f32 1.442695, %v1273_v23 }
 0x1c9   :  { %1879 = vpow2.f32 %v1279_v24  ;;  %v1206_v53 = vrot.slane %v2308_v13, %v2214_v5  ;;  %v1267_v9 = vsub.f32 %v2131_v49, %v1202_v11  ;;  %v1285_v14 = vmul.f32 1.442695, %v1266_v43 }
 0x1ca   :  { %1881 = vpow2.f32 %v1281_v32  ;;  %v1238_v10 = vrot.slane %v2314_v17, %v2214_v5  ;;  %v1275_v18 = vsub.f32 %v2135_v51, %v1234_v52  ;;  %v1301_v21 = vmul.f32 1.442695, %v1274_v30 }
 0x1cb   :  { %1883 = vpow2.f32 %v1295_v42  ;;  %v1210_v22 = vrot.slane %v2308_v13, %v2232_v35  ;;  %v1268_v24 = vsub.f32 %v2143_v55, %v1206_v53  ;;  %v1287_v32 = vmul.f32 1.442695, %v1267_v9 }
 0x1cc   :  { %1885 = vpow2.f32 %v1297_v26  ;;  %v1242_v49 = vrot.slane %v2314_v17, %v2232_v35  ;;  %v1276_v27 = vsub.f32 %v2145_v56, %v1238_v10  ;;  %v1303_v20 = vmul.f32 1.442695, %v1275_v18 }
 0x1cd   :  { %1887 = vpow2.f32 %v1283_v48  ;;  %v1214_v51 = vrot.slane %v2308_v13, %v2237_v60  ;;  %v1269_v55 = vsub.f32 %v2151_v61, %v1210_v22  ;;  %v1289_v46 = vmul.f32 1.442695, %v1268_v24 }
 0x1ce   :  { %1889 = vpow2.f32 %v1299_v54  ;;  %v1246_v56 = vrot.slane %v2314_v17, %v2237_v60  ;;  %v1277_v50 = vsub.f32 %v2149_v58, %v1242_v49  ;;  %v1305_v31 = vmul.f32 1.442695, %v1276_v27 }
 0x1cf   :  { %1891 = vpow2.f32 %v1285_v14  ;;  %v1270_v13 = vsub.f32 %v2189_v33, %v1214_v51  ;;  %v1291_v61 = vmul.f32 1.442695, %v1269_v55 }
 0x1d0   :  { %1893 = vpow2.f32 %v1301_v21  ;;  %v1278_v23 = vsub.f32 %v2191_v34, %v1246_v56  ;;  %v1307_v17 = vmul.f32 1.442695, %v1277_v50 }
 0x1d1   :  { %1895 = vpow2.f32 %v1287_v32  ;;  %v1293_v26 = vmul.f32 1.442695, %v1270_v13 }
 0x1d2   :  { %1897 = vpow2.f32 %v1303_v20  ;;  %v1309_v33 = vmul.f32 1.442695, %v1278_v23 }
 0x1d3   :  { %v2340_v6 = vpop.eup %1879  ;;  %1899 = vpow2.f32 %v1289_v46 }
 0x1d4   :  { %v2342_v36 = vpop.eup %1881  ;;  %1328 = vperm.xlu0 %1846, %v2340_v6   ;;  %1901 = vpow2.f32 %v1305_v31 }
 0x1d5   :  { %1331 = vperm.xlu1 %1845, %v2342_v36   ;;  %v2358_v28 = vpop.eup %1883  ;;  %1903 = vpow2.f32 %v1291_v61 }
 0x1d6   :  { %v2360_v38 = vpop.eup %1885  ;;  %1905 = vpow2.f32 %v1307_v17 }
 0x1d7   :  { %v2370_v37 = vpop.eup %1887  ;;  %1907 = vpow2.f32 %v1293_v26 }
 0x1d8   :  { %1352 = vperm.xlu0 %1846, %v2358_v28   ;;  %v2372_v40 = vpop.eup %1889  ;;  %1909 = vpow2.f32 %v1309_v33 }
 0x1d9   :  { %1355 = vperm.xlu1 %1845, %v2360_v38   ;;  %v2378_v42 = vpop.eup %1891 }
 0x1da   :  { %v2380_v58 = vpop.eup %1893 }
 0x1db   :  { %v2384_v11 = vpop.eup %1895 }
 0x1dc   :  { %1334 = vperm.xlu0 %1846, %v2370_v37   ;;  %v2386_v43 = vpop.eup %1897 }
 0x1dd   :  { %1358 = vperm.xlu1 %1845, %v2372_v40   ;;  %v2390_v34 = vpop.eup %1899 }
 0x1de   :  { %v2392_v48 = vpop.eup %1901 }
 0x1df   :  { %v2396_v52 = vpop.eup %1903 }
 0x1e0   :  { %1337 = vperm.xlu0 %1846, %v2378_v42   ;;  %v2398_v30 = vpop.eup %1905 }
 0x1e1   :  { %1361 = vperm.xlu1 %1845, %v2380_v58   ;;  %v2402_v54 = vpop.eup %1907 }
 0x1e2   :  { %v2404_v53 = vpop.eup %1909 }
 0x1e3   :  { %2677 = vst [vmem:[#allocation2_spill] sm:$0xff] %v2404_v53 }
 0x1e4   :  { %1340 = vperm.xlu0 %1846, %v2384_v11  }
 0x1e5   :  { %1364 = vperm.xlu1 %1845, %v2386_v43  }
 0x1e8   :  { %1343 = vperm.xlu0 %1846, %v2390_v34  }
 0x1e9   :  { %1367 = vperm.xlu1 %1845, %v2392_v48  }
 0x1ec   :  { %1346 = vperm.xlu0 %1846, %v2396_v52  }
 0x1ed   :  { %1370 = vperm.xlu1 %1845, %v2398_v30  }
 0x1f0   :  { %1349 = vperm.xlu0 %1846, %v2402_v54  }
 0x1f1   :  { %1373 = vperm.xlu1 %1845, %v2404_v53  }
 0x20a   :  { %v527_v9 = vpop.permute.xlu1 %526 }
 0x20b   :  { %v530_v10 = vpop.permute.xlu0 %529  ;;  %v576_v21 = vrot.slane %v527_v9, %v2045_v59 }
 0x20c   :  { %v580_v22 = vrot.slane %v530_v10, %v2045_v59 }
 0x20e   :  { %v533_v14 = vpop.permute.xlu1 %532  ;;  %v637_v20 = vsel %vm349_vm1, %v580_v22, %v576_v21 }
 0x20f   :  { %v584_v24 = vrot.slane %v533_v14, %v2045_v59  ;;  %v542_v55 = vpop.permute.xlu0 %541 }
 0x210   :  { %v596_v13 = vrot.slane %v542_v55, %v2045_v59 }
 0x211   :  { %v638_v51 = vsel %vm351_vm2, %v584_v24, %v637_v20 }
 0x212   :  { %v536_v18 = vpop.permute.xlu1 %535 }
 0x213   :  { %v588_v49 = vrot.slane %v536_v18, %v2045_v59 }
 0x215   :  { %v639_v56 = vsel %vm353_vm3, %v588_v49, %v638_v51 }
 0x216   :  { %v539_v32 = vpop.permute.xlu1 %538 }
 0x217   :  { %v592_v27 = vrot.slane %v539_v32, %v2045_v59 }
 0x219   :  { %v640_v50 = vsel %vm355_vm4, %v592_v27, %v639_v56 }
 0x21a   :  { %v545_v46 = vpop.permute.xlu1 %544  ;;  %v641_v17 = vsel %vm357_vm5, %v596_v13, %v640_v50  ;;  %v563_v24 = vpop.permute.xlu0 %562 }
 0x21b   :  { %v600_v31 = vrot.slane %v545_v46, %v2045_v59  ;;  %v624_v46 = vrot.slane %v563_v24, %v2045_v59 }
 0x21d   :  { %v642_v26 = vsel %vm359_vm6, %v600_v31, %v641_v17 }
 0x21e   :  { %v548_v61 = vpop.permute.xlu1 %547  ;;  %v569_v50 = vpop.permute.xlu0 %568 }
 0x21f   :  { %v604_v23 = vrot.slane %v548_v61, %v2045_v59 }
 0x221   :  { %v643_v33 = vsel %vm361_vm7, %v604_v23, %v642_v26  ;;  %v632_v23 = vrot.slane %v569_v50, %v2045_v59 }
 0x222   :  { %v551_v9 = vpop.permute.xlu1 %550  ;;  %v653_v14 = vsel %vm372_vm8, %v643_v33, 0.0 }
 0x223   :  { %654 = vadd.xlane.f32.xlu0 %v653_v14  ;;  %v608_v32 = vrot.slane %v551_v9, %v2045_v59 }
 0x226   :  { %v554_v10 = vpop.permute.xlu1 %553 }
 0x227   :  { %v612_v21 = vrot.slane %v554_v10, %v2045_v59 }
 0x229   :  { %v644_v27 = vsel %vm349_vm1, %v612_v21, %v608_v32 }
 0x22a   :  { %v557_v18 = vpop.permute.xlu1 %556 }
 0x22b   :  { %v616_v22 = vrot.slane %v557_v18, %v2045_v59 }
 0x22d   :  { %v645_v51 = vsel %vm351_vm2, %v616_v22, %v644_v27 }
 0x22e   :  { %v560_v49 = vpop.permute.xlu1 %559 }
 0x22f   :  { %v620_v20 = vrot.slane %v560_v49, %v2045_v59 }
 0x231   :  { %v646_v55 = vsel %vm353_vm3, %v620_v20, %v645_v51 }
 0x232   :  { %v566_v56 = vpop.permute.xlu1 %565  ;;  %v647_v13 = vsel %vm355_vm4, %v624_v46, %v646_v55 }
 0x233   :  { %v628_v31 = vrot.slane %v566_v56, %v2045_v59 }
 0x235   :  { %v648_v61 = vsel %vm357_vm5, %v628_v31, %v647_v13 }
 0x236   :  { %v572_v17 = vpop.permute.xlu1 %571  ;;  %v649_v33 = vsel %vm359_vm6, %v632_v23, %v648_v61 }
 0x237   :  { %v636_v26 = vrot.slane %v572_v17, %v2045_v59 }
 0x239   :  { %v650_v9 = vsel %vm361_vm7, %v636_v26, %v649_v33 }
 0x23a   :  { %v656_v14 = vsel %vm372_vm8, %v650_v9, 0.0 }
 0x23b   :  { %657 = vadd.xlane.f32.xlu1 %v656_v14 }
 0x253   :  { %v1329_v10 = vpop.permute.xlu0 %1328 }
 0x254   :  { %v1332_v18 = vpop.permute.xlu1 %1331  ;;  %v1378_v56 = vrot.slane %v1329_v10, %v2045_v59 }
 0x255   :  { %v1382_v46 = vrot.slane %v1332_v18, %v2045_v59 }
 0x257   :  { %v1353_v21 = vpop.permute.xlu0 %1352  ;;  %v1439_v9 = vsel %vm349_vm1, %v1382_v46, %v1378_v56 }
 0x258   :  { %v1356_v22 = vpop.permute.xlu1 %1355  ;;  %v1410_v61 = vrot.slane %v1353_v21, %v2045_v59 }
 0x259   :  { %v1414_v13 = vrot.slane %v1356_v22, %v2045_v59 }
 0x25b   :  { %v1335_v24 = vpop.permute.xlu0 %1334 }
 0x25c   :  { %v1359_v32 = vpop.permute.xlu1 %1358  ;;  %v1386_v31 = vrot.slane %v1335_v24, %v2045_v59 }
 0x25d   :  { %v1418_v17 = vrot.slane %v1359_v32, %v2045_v59 }
 0x25e   :  { %v1440_v24 = vsel %vm351_vm2, %v1386_v31, %v1439_v9 }
 0x25f   :  { %v1338_v49 = vpop.permute.xlu0 %1337 }
 0x260   :  { %v1362_v27 = vpop.permute.xlu1 %1361  ;;  %v1390_v23 = vrot.slane %v1338_v49, %v2045_v59  ;;  %v1446_v49 = vsel %vm349_vm1, %v1414_v13, %v1410_v61 }
 0x261   :  { %v1422_v14 = vrot.slane %v1362_v27, %v2045_v59  ;;  %v1447_v53 = vsel %vm351_vm2, %v1418_v17, %v1446_v49 }
 0x262   :  { %v1441_v32 = vsel %vm353_vm3, %v1390_v23, %v1440_v24 }
 0x263   :  { %v1341_v20 = vpop.permute.xlu0 %1340  ;;  %v1448_v56 = vsel %vm353_vm3, %v1422_v14, %v1447_v53 }
 0x264   :  { %v1365_v51 = vpop.permute.xlu1 %1364  ;;  %v1394_v26 = vrot.slane %v1341_v20, %v2045_v59 }
 0x265   :  { %v1426_v22 = vrot.slane %v1365_v51, %v2045_v59 }
 0x266   :  { %v1442_v46 = vsel %vm355_vm4, %v1394_v26, %v1441_v32 }
 0x267   :  { %v1344_v55 = vpop.permute.xlu0 %1343  ;;  %v1449_v13 = vsel %vm355_vm4, %v1426_v22, %v1448_v56 }
 0x268   :  { %v1368_v50 = vpop.permute.xlu1 %1367  ;;  %v1398_v10 = vrot.slane %v1344_v55, %v2045_v59 }
 0x269   :  { %v1430_v20 = vrot.slane %v1368_v50, %v2045_v59 }
 0x26a   :  { %v1443_v31 = vsel %vm357_vm5, %v1398_v10, %v1442_v46 }
 0x26b   :  { %v1347_v33 = vpop.permute.xlu0 %1346  ;;  %v1450_v23 = vsel %vm357_vm5, %v1430_v20, %v1449_v13 }
 0x26c   :  { %v1371_v18 = vpop.permute.xlu1 %1370  ;;  %v1402_v21 = vrot.slane %v1347_v33, %v2045_v59 }
 0x26d   :  { %v1434_v27 = vrot.slane %v1371_v18, %v2045_v59 }
 0x26e   :  { %v1444_v50 = vsel %vm359_vm6, %v1402_v21, %v1443_v31 }
 0x26f   :  { %v1350_v55 = vpop.permute.xlu0 %1349  ;;  %v1451_v9 = vsel %vm359_vm6, %v1434_v27, %v1450_v23 }
 0x270   :  { %v1374_v51 = vpop.permute.xlu1 %1373  ;;  %v1406_v33 = vrot.slane %v1350_v55, %v2045_v59 }
 0x271   :  { %v1438_v61 = vrot.slane %v1374_v51, %v2045_v59 }
 0x272   :  { %v1445_v17 = vsel %vm361_vm7, %v1406_v33, %v1444_v50 }
 0x273   :  { %v1455_v26 = vsel %vm372_vm8, %v1445_v17, 0.0  ;;  %v1452_v53 = vsel %vm361_vm7, %v1438_v61, %v1451_v9 }
 0x274   :  { %1456 = vadd.xlane.f32.xlu0 %v1455_v26  ;;  %v1458_v14 = vsel %vm372_vm8, %v1452_v53, 0.0 }
 0x278   :  { %1459 = vadd.xlane.f32.xlu0 %v1458_v14 }
 0x2b0   :  { %v655_v10 = vpop.xlane.xlu0 %654 }
 0x2b1   :  { %1911 = vrcp.f32 %v655_v10 }
 0x2bb   :  { %v1912_v18 = vpop.eup %1911 }
 0x2bc   :  { %v670_v59 = vrot.slane %v1912_v18, %v2208_v0  ;;  %v666_v24 = vrot.slane %v1912_v18, %v1953_v12  ;;  %v682_v49 = vrot.slane %v1912_v18, %v2223_v19  ;;  %v674_v32 = vrot.slane %v1912_v18, %v2211_v4 }
 0x2bd   :  { %v690_v27 = vrot.slane %v1912_v18, %v2232_v35  ;;  %v678_v55 = vrot.slane %v1912_v18, %v2217_v8  ;;  %v686_v56 = vrot.slane %v1912_v18, %v2214_v5 }
 0x2be   :  { %v744_v22 = vmul.f32 %v2245_v57, %v670_v59  ;;  %v743_v21 = vmul.f32 %v2243_v47, %v666_v24  ;;  %v747_v20 = vmul.f32 %v2268_v29, %v682_v49  ;;  %v745_v46 = vmul.f32 %v2254_v15, %v674_v32 }
 0x2bf   :  { %v749_v57 = vmul.f32 %v2273_v39, %v690_v27  ;;  %v746_v47 = vmul.f32 %v2263_v25, %v678_v55  ;;  %v748_v29 = vmul.f32 %v2256_v16, %v686_v56  ;;  %v694_v15 = vrot.slane %v1912_v18, %v2237_v60 }
 0x2c0   :  { %766 = vperm.xlu0 %1846, %v744_v22   ;;  %761 = vperm.xlu1 %1845, %v743_v21  }
 0x2c1   :  { %v750_v51 = vmul.f32 %v2278_v62, %v694_v15 }
 0x2c4   :  { %781 = vperm.xlu0 %1846, %v747_v20   ;;  %771 = vperm.xlu1 %1845, %v745_v46  }
 0x2c8   :  { %v658_v31 = vpop.xlane.xlu1 %657  ;;  %791 = vperm.xlu0 %1846, %v749_v57   ;;  %776 = vperm.xlu1 %1845, %v746_v47   ;;  %v2678_v47 = vld [vmem:[#allocation2_spill] sm:$0xff] }
 0x2c9   :  { %1913 = vrcp.f32 %v658_v31 }
 0x2cc   :  { %786 = vperm.xlu1 %1845, %v748_v29  }
 0x2d0   :  { %796 = vperm.xlu1 %1845, %v750_v51  }
 0x2d3   :  { %v1914_v33 = vpop.eup %1913 }
 0x2d4   :  { %v698_v13 = vrot.slane %v1914_v33, %v1953_v12  ;;  %v702_v39 = vrot.slane %v1914_v33, %v2208_v0  ;;  %v706_v50 = vrot.slane %v1914_v33, %v2211_v4  ;;  %v710_v23 = vrot.slane %v1914_v33, %v2217_v8 }
 0x2d5   :  { %v714_v17 = vrot.slane %v1914_v33, %v2223_v19  ;;  %v718_v26 = vrot.slane %v1914_v33, %v2214_v5  ;;  %v722_v9 = vrot.slane %v1914_v33, %v2232_v35  ;;  %v726_v53 = vrot.slane %v1914_v33, %v2237_v60 }
 0x2d6   :  { %v751_v25 = vmul.f32 %v2286_v44, %v698_v13  ;;  %v752_v61 = vmul.f32 %v2293_v63, %v702_v39  ;;  %v753_v16 = vmul.f32 %v2296_v45, %v706_v50  ;;  %v754_v62 = vmul.f32 %v2299_v7, %v710_v23 }
 0x2d7   :  { %v755_v44 = vmul.f32 %v2280_v1, %v714_v17  ;;  %v756_v63 = vmul.f32 %v2302_v2, %v718_v26  ;;  %v757_v45 = vmul.f32 %v2288_v3, %v722_v9  ;;  %v758_v7 = vmul.f32 %v2305_v41, %v726_v53  ;;  %v2554_v53 = vld [vmem:[%s2674_s2 + $0x8] sm:$0xff] }
 0x2d8   :  { %801 = vperm.xlu0 %1846, %v751_v25   ;;  %806 = vperm.xlu1 %1845, %v752_v61  }
 0x2dc   :  { %811 = vperm.xlu0 %1846, %v753_v16   ;;  %816 = vperm.xlu1 %1845, %v754_v62  }
 0x2e0   :  { %821 = vperm.xlu0 %1846, %v755_v44   ;;  %826 = vperm.xlu1 %1845, %v756_v63  }
 0x2e4   :  { %831 = vperm.xlu0 %1846, %v757_v45   ;;  %836 = vperm.xlu1 %1845, %v758_v7  }
 0x301   :  { %v1457_v14 = vpop.xlane.xlu0 %1456 }
 0x302   :  { %1915 = vrcp.f32 %v1457_v14 }
 0x305   :  { %v1460_v10 = vpop.xlane.xlu0 %1459 }
 0x306   :  { %1917 = vrcp.f32 %v1460_v10 }
 0x30c   :  { %v1916_v18 = vpop.eup %1915 }
 0x30d   :  { %v1472_v1 = vrot.slane %v1916_v18, %v2208_v0  ;;  %v1468_v2 = vrot.slane %v1916_v18, %v1953_v12  ;;  %v1476_v20 = vrot.slane %v1916_v18, %v2211_v4  ;;  %v1496_v57 = vrot.slane %v1916_v18, %v2237_v60 }
 0x30f   :  { %v1546_v59 = vmul.f32 %v2342_v36, %v1472_v1  ;;  %v1545_v24 = vmul.f32 %v2340_v6, %v1468_v2  ;;  %v1547_v6 = vmul.f32 %v2370_v37, %v1476_v20 }
 0x310   :  { %v1918_v22 = vpop.eup %1917 }
 0x311   :  { %1568 = vperm.xlu0 %1846, %v1546_v59   ;;  %1563 = vperm.xlu1 %1845, %v1545_v24   ;;  %v1504_v3 = vrot.slane %v1918_v22, %v2208_v0  ;;  %v1500_v41 = vrot.slane %v1918_v22, %v1953_v12  ;;  %v1508_v32 = vrot.slane %v1918_v22, %v2211_v4 }
 0x312   :  { %v1512_v46 = vrot.slane %v1918_v22, %v2217_v8  ;;  %v1480_v0 = vrot.slane %v1916_v18, %v2217_v8  ;;  %v1484_v4 = vrot.slane %v1916_v18, %v2223_v19  ;;  %v1520_v27 = vrot.slane %v1918_v22, %v2214_v5 }
 0x313   :  { %v1554_v21 = vmul.f32 %v2360_v38, %v1504_v3  ;;  %v1553_v49 = vmul.f32 %v2358_v28, %v1500_v41  ;;  %v1555_v36 = vmul.f32 %v2372_v40, %v1508_v32  ;;  %v1516_v38 = vrot.slane %v1918_v22, %v2223_v19 }
 0x314   :  { %v1556_v12 = vmul.f32 %v2380_v58, %v1512_v46  ;;  %v1548_v28 = vmul.f32 %v2378_v42, %v1480_v0  ;;  %v1549_v37 = vmul.f32 %v2384_v11, %v1484_v4  ;;  %v1488_v8 = vrot.slane %v1916_v18, %v2214_v5 }
 0x315   :  { %1608 = vperm.xlu0 %1846, %v1554_v21   ;;  %1603 = vperm.xlu1 %1845, %v1553_v49   ;;  %v1557_v40 = vmul.f32 %v2386_v43, %v1516_v38  ;;  %v1558_v58 = vmul.f32 %v2392_v48, %v1520_v27  ;;  %v1524_v55 = vrot.slane %v1918_v22, %v2232_v35 }
 0x316   :  { %v1550_v42 = vmul.f32 %v2390_v34, %v1488_v8  ;;  %v1492_v19 = vrot.slane %v1916_v18, %v2232_v35  ;;  %v1528_v5 = vrot.slane %v1918_v22, %v2237_v60  ;;  %v1552_v48 = vmul.f32 %v2402_v54, %v1496_v57 }
 0x317   :  { %v1559_v43 = vmul.f32 %v2398_v30, %v1524_v55 }
 0x318   :  { %v1551_v11 = vmul.f32 %v2396_v52, %v1492_v19  ;;  %v1560_v34 = vmul.f32 %v2678_v47, %v1528_v5  ;;  %v2539_v52 = vld [vmem:[%s2674_s2] sm:$0xff] }
 0x319   :  { %1613 = vperm.xlu0 %1846, %v1555_v36   ;;  %1573 = vperm.xlu1 %1845, %v1547_v6  }
 0x31d   :  { %1618 = vperm.xlu0 %1846, %v1556_v12   ;;  %1578 = vperm.xlu1 %1845, %v1548_v28  }
 0x321   :  { %1623 = vperm.xlu0 %1846, %v1557_v40   ;;  %1583 = vperm.xlu1 %1845, %v1549_v37  }
 0x325   :  { %1628 = vperm.xlu0 %1846, %v1558_v58   ;;  %1588 = vperm.xlu1 %1845, %v1550_v42  }
 0x329   :  { %1633 = vperm.xlu0 %1846, %v1559_v43   ;;  %1593 = vperm.xlu1 %1845, %v1551_v11  }
 0x32d   :  { %1598 = vperm.xlu0 %1846, %v1552_v48   ;;  %1638 = vperm.xlu1 %1845, %v1560_v34  }
 0x33f   :  { %v762_v56 = vpop.permute.xlu1 %761  ;;  %v767_v31 = vpop.permute.xlu0 %766 }
 0x340   :  { %v839_v60 = vmul.f32 %v762_v56, %v2539_v52  ;;  %v840_v51 = vmul.f32 %v767_v31, %v2539_v52 }
 0x342   :  { %v855_v25 = vsel %vm218_vm0, %v839_v60, 0.0  ;;  %v862_v61 = vsel %vm218_vm0, %v840_v51, 0.0 }
 0x343   :  { %v772_v35 = vpop.permute.xlu1 %771  ;;  %v782_v15 = vpop.permute.xlu0 %781  ;;  %v856_v17 = vrot.slane %v855_v25, 4  ;;  %v863_v26 = vrot.slane %v862_v61, 4 }
 0x344   :  { %v841_v54 = vmul.f32 %v772_v35, %v2539_v52  ;;  %v843_v23 = vmul.f32 %v782_v15, %v2539_v52 }
 0x345   :  { %v857_v14 = vadd.f32 %v856_v17, %v855_v25  ;;  %v864_v10 = vadd.f32 %v863_v26, %v862_v61 }
 0x346   :  { %v869_v50 = vsel %vm218_vm0, %v841_v54, 0.0  ;;  %v883_v45 = vsel %vm218_vm0, %v843_v23, 0.0 }
 0x347   :  { %v777_v29 = vpop.permute.xlu1 %776  ;;  %v792_v13 = vpop.permute.xlu0 %791  ;;  %v870_v9 = vrot.slane %v869_v50, 4  ;;  %v884_v59 = vrot.slane %v883_v45, 4  ;;  %v858_v20 = vrot.slane %v857_v14, 2  ;;  %v865_v36 = vrot.slane %v864_v10, 2 }
 0x348   :  { %v842_v33 = vmul.f32 %v777_v29, %v2539_v52  ;;  %v845_v49 = vmul.f32 %v792_v13, %v2539_v52 }
 0x349   :  { %v871_v2 = vadd.f32 %v870_v9, %v869_v50  ;;  %v885_v12 = vadd.f32 %v884_v59, %v883_v45  ;;  %v859_v42 = vadd.f32 %v858_v20, %v857_v14  ;;  %v866_v55 = vadd.f32 %v865_v36, %v864_v10 }
 0x34a   :  { %v876_v16 = vsel %vm218_vm0, %v842_v33, 0.0  ;;  %v897_v37 = vsel %vm218_vm0, %v845_v49, 0.0 }
 0x34b   :  { %v787_v30 = vpop.permute.xlu1 %786  ;;  %v877_v7 = vrot.slane %v876_v16, 4  ;;  %v872_v0 = vrot.slane %v871_v2, 2  ;;  %v886_v5 = vrot.slane %v885_v12, 2  ;;  %v898_v56 = vrot.slane %v897_v37, 4 }
 0x34c   :  { %v844_v44 = vmul.f32 %v787_v30, %v2539_v52  ;;  %v860_v60 = vrot.slane %v859_v42, 1  ;;  %v867_v51 = vrot.slane %v866_v55, 1 }
 0x34d   :  { %v878_v3 = vadd.f32 %v877_v7, %v876_v16  ;;  %v873_v57 = vadd.f32 %v872_v0, %v871_v2  ;;  %v899_v50 = vadd.f32 %v898_v56, %v897_v37 }
 0x34e   :  { %v890_v18 = vsel %vm218_vm0, %v844_v44, 0.0  ;;  %v868_v9 = vadd.f32 %v867_v51, %v866_v55 }
 0x34f   :  { %v797_v39 = vpop.permute.xlu1 %796  ;;  %v891_v32 = vrot.slane %v890_v18, 4  ;;  %v879_v4 = vrot.slane %v878_v3, 2  ;;  %v874_v13 = vrot.slane %v873_v57, 1 }
 0x350   :  { %v846_v41 = vmul.f32 %v797_v39, %v2539_v52  ;;  %v887_v39 = vadd.f32 %v886_v5, %v885_v12 }
 0x351   :  { %v892_v27 = vadd.f32 %v891_v32, %v890_v18  ;;  %v880_v34 = vadd.f32 %v879_v4, %v878_v3  ;;  %v875_v10 = vadd.f32 %v874_v13, %v873_v57 }
 0x352   :  { %v904_v40 = vsel %vm218_vm0, %v846_v41, 0.0  ;;  %v888_v18 = vrot.slane %v887_v39, 1 }
 0x353   :  { %v905_v48 = vrot.slane %v904_v40, 4  ;;  %v893_v31 = vrot.slane %v892_v27, 2  ;;  %v881_v61 = vrot.slane %v880_v34, 1 }
 0x354   :  { %v889_v0 = vadd.f32 %v888_v18, %v887_v39 }
 0x355   :  { %v906_v25 = vadd.f32 %v905_v48, %v904_v40  ;;  %v894_v16 = vadd.f32 %v893_v31, %v892_v27  ;;  %v882_v59 = vadd.f32 %v881_v61, %v880_v34 }
 0x357   :  { %v802_v62 = vpop.permute.xlu0 %801  ;;  %v807_v63 = vpop.permute.xlu1 %806  ;;  %v895_v41 = vrot.slane %v894_v16, 1 }
 0x358   :  { %v848_v1 = vmul.f32 %v807_v63, %v2554_v53  ;;  %v847_v24 = vmul.f32 %v802_v62, %v2554_v53  ;;  %v861_v63 = vadd.f32 %v860_v60, %v859_v42 }
 0x359   :  { %v896_v27 = vadd.f32 %v895_v41, %v894_v16 }
 0x35a   :  { %v918_v6 = vsel %vm218_vm0, %v848_v1, 0.0  ;;  %v911_v28 = vsel %vm218_vm0, %v847_v24, 0.0  ;;  %v907_v1 = vrot.slane %v906_v25, 2  ;;  %v900_v24 = vrot.slane %v899_v50, 2 }
 0x35b   :  { %v812_v22 = vpop.permute.xlu0 %811  ;;  %v817_v21 = vpop.permute.xlu1 %816  ;;  %v919_v8 = vrot.slane %v918_v6, 4  ;;  %v912_v19 = vrot.slane %v911_v28, 4  ;;  %v1786_v20 = vsel %vm349_vm1, %v868_v9, %v861_v63 }
 0x35c   :  { %v849_v46 = vmul.f32 %v812_v22, %v2554_v53  ;;  %v850_v38 = vmul.f32 %v817_v21, %v2554_v53  ;;  %v908_v12 = vadd.f32 %v907_v1, %v906_v25  ;;  %v2579_v4 = vadd.f32 %v900_v24, %v899_v50 }
 0x35d   :  { %v920_v29 = vadd.f32 %v919_v8, %v918_v6  ;;  %v913_v54 = vadd.f32 %v912_v19, %v911_v28 }
 0x35e   :  { %v925_v43 = vsel %vm218_vm0, %v849_v46, 0.0  ;;  %v932_v47 = vsel %vm218_vm0, %v850_v38, 0.0  ;;  %v1787_v46 = vsel %vm351_vm2, %v875_v10, %v1786_v20 }
 0x35f   :  { %v822_v58 = vpop.permute.xlu0 %821  ;;  %v827_v11 = vpop.permute.xlu1 %826  ;;  %v926_v15 = vrot.slane %v925_v43, 4  ;;  %v933_v33 = vrot.slane %v932_v47, 4  ;;  %v921_v62 = vrot.slane %v920_v29, 2  ;;  %v914_v45 = vrot.slane %v913_v54, 2 }
 0x360   :  { %v851_v35 = vmul.f32 %v822_v58, %v2554_v53  ;;  %v852_v30 = vmul.f32 %v827_v11, %v2554_v53  ;;  %v1788_v38 = vsel %vm353_vm3, %v882_v59, %v1787_v46 }
 0x361   :  { %v927_v17 = vadd.f32 %v926_v15, %v925_v43  ;;  %v934_v7 = vadd.f32 %v933_v33, %v932_v47  ;;  %v922_v21 = vadd.f32 %v921_v62, %v920_v29  ;;  %v915_v36 = vadd.f32 %v914_v45, %v913_v54 }
 0x362   :  { %v939_v23 = vsel %vm218_vm0, %v851_v35, 0.0  ;;  %v946_v26 = vsel %vm218_vm0, %v852_v30, 0.0  ;;  %v1789_v48 = vsel %vm355_vm4, %v889_v0, %v1788_v38  ;;  %v909_v47 = vrot.slane %v908_v12, 1 }
 0x363   :  { %v837_v44 = vpop.permute.xlu1 %836  ;;  %v832_v14 = vpop.permute.xlu0 %831  ;;  %v940_v2 = vrot.slane %v939_v23, 4  ;;  %v947_v22 = vrot.slane %v946_v26, 4  ;;  %v928_v49 = vrot.slane %v927_v17, 2  ;;  %v935_v6 = vrot.slane %v934_v7, 2 }
 0x364   :  { %v854_v3 = vmul.f32 %v837_v44, %v2554_v53  ;;  %v853_v32 = vmul.f32 %v832_v14, %v2554_v53  ;;  %v923_v8 = vrot.slane %v922_v21, 1  ;;  %v916_v43 = vrot.slane %v915_v36, 1 }
 0x365   :  { %v941_v28 = vadd.f32 %v940_v2, %v939_v23  ;;  %v948_v40 = vadd.f32 %v947_v22, %v946_v26  ;;  %v929_v58 = vadd.f32 %v928_v49, %v927_v17  ;;  %v936_v11 = vadd.f32 %v935_v6, %v934_v7 }
 0x366   :  { %v960_v37 = vsel %vm218_vm0, %v854_v3, 0.0  ;;  %v953_v42 = vsel %vm218_vm0, %v853_v32, 0.0  ;;  %v924_v30 = vadd.f32 %v923_v8, %v922_v21  ;;  %v917_v39 = vadd.f32 %v916_v43, %v915_v36 }
 0x367   :  { %v942_v34 = vrot.slane %v941_v28, 2  ;;  %v961_v56 = vrot.slane %v960_v37, 4  ;;  %v949_v35 = vrot.slane %v948_v40, 2  ;;  %v954_v31 = vrot.slane %v953_v42, 4 }
 0x368   :  { %v930_v60 = vrot.slane %v929_v58, 1  ;;  %v937_v25 = vrot.slane %v936_v11, 1  ;;  %v902_v2 = vrot.slane %v2579_v4, 1  ;;  %v2594_v59 = vsel %vm357_vm5, %v896_v27, %v1789_v48 }
 0x369   :  { %v943_v23 = vadd.f32 %v942_v34, %v941_v28  ;;  %v962_v16 = vadd.f32 %v961_v56, %v960_v37  ;;  %v950_v26 = vadd.f32 %v949_v35, %v948_v40  ;;  %v955_v44 = vadd.f32 %v954_v31, %v953_v42 }
 0x36a   :  { %v931_v45 = vadd.f32 %v930_v60, %v929_v58  ;;  %v2598_v32 = vadd.f32 %v909_v47, %v908_v12  ;;  %v1793_v20 = vsel %vm349_vm1, %v924_v30, %v917_v39  ;;  %v938_v46 = vadd.f32 %v937_v25, %v936_v11 }
 0x36b   :  { %v944_v3 = vrot.slane %v943_v23, 1  ;;  %v963_v41 = vrot.slane %v962_v16, 2  ;;  %v956_v36 = vrot.slane %v955_v44, 2  ;;  %v951_v28 = vrot.slane %v950_v26, 1 }
 0x36c   :  { %v1794_v0 = vsel %vm351_vm2, %v931_v45, %v1793_v20 }
 0x36d   :  { %v945_v12 = vadd.f32 %v944_v3, %v943_v23  ;;  %v952_v47 = vadd.f32 %v951_v28, %v950_v26  ;;  %v1795_v34 = vsel %vm353_vm3, %v938_v46, %v1794_v0 }
 0x36f   :  { %v1796_v25 = vsel %vm355_vm4, %v945_v12, %v1795_v34 }
 0x370   :  { %v2619_v3 = vsel %vm357_vm5, %v952_v47, %v1796_v25 }
 0x390   :  { %v1564_v55 = vpop.permute.xlu1 %1563  ;;  %v1569_v19 = vpop.permute.xlu0 %1568 }
 0x391   :  { %v1641_v57 = vmul.f32 %v1564_v55, %v2539_v52  ;;  %v1642_v5 = vmul.f32 %v1569_v19, %v2539_v52  ;;  %v964_v55 = vadd.f32 %v963_v41, %v962_v16 }
 0x393   :  { %v1658_v29 = vsel %vm1657_vm9, %v1641_v57, 0.0  ;;  %v1665_v15 = vsel %vm1657_vm9, %v1642_v5, 0.0  ;;  %v957_v57 = vadd.f32 %v956_v36, %v955_v44 }
 0x394   :  { %v1659_v51 = vrot.slane %v1658_v29, 4  ;;  %v1666_v54 = vrot.slane %v1665_v15, 4  ;;  %v1604_v33 = vpop.permute.xlu1 %1603  ;;  %v1609_v13 = vpop.permute.xlu0 %1608 }
 0x395   :  { %v1649_v61 = vmul.f32 %v1604_v33, %v2554_v53  ;;  %v1650_v50 = vmul.f32 %v1609_v13, %v2554_v53 }
 0x396   :  { %v1660_v62 = vadd.f32 %v1659_v51, %v1658_v29  ;;  %v1667_v17 = vadd.f32 %v1666_v54, %v1665_v15  ;;  %v965_v54 = vrot.slane %v964_v55, 1 }
 0x397   :  { %v1714_v63 = vsel %vm1657_vm9, %v1649_v61, 0.0  ;;  %v1721_v9 = vsel %vm1657_vm9, %v1650_v50, 0.0  ;;  %v958_v61 = vrot.slane %v957_v57, 1 }
 0x398   :  { %v1661_v7 = vrot.slane %v1660_v62, 2  ;;  %v1715_v14 = vrot.slane %v1714_v63, 4  ;;  %v1722_v10 = vrot.slane %v1721_v9, 4  ;;  %v1574_v18 = vpop.permute.xlu1 %1573  ;;  %v1614_v1 = vpop.permute.xlu0 %1613  ;;  %v1668_v24 = vrot.slane %v1667_v17, 2 }
 0x399   :  { %v1651_v22 = vmul.f32 %v1614_v1, %v2554_v53  ;;  %v1643_v49 = vmul.f32 %v1574_v18, %v2539_v52  ;;  %v2623_v28 = vadd.f32 %v958_v61, %v957_v57 }
 0x39a   :  { %v1716_v21 = vadd.f32 %v1715_v14, %v1714_v63  ;;  %v1723_v6 = vadd.f32 %v1722_v10, %v1721_v9  ;;  %v1662_v38 = vadd.f32 %v1661_v7, %v1660_v62  ;;  %v1669_v27 = vadd.f32 %v1668_v24, %v1667_v17 }
 0x39b   :  { %v1728_v8 = vsel %vm1657_vm9, %v1651_v22, 0.0  ;;  %v1672_v43 = vsel %vm1657_vm9, %v1643_v49, 0.0  ;;  %v2616_v22 = vadd.f32 %v965_v54, %v964_v55 }
 0x39c   :  { %v1579_v40 = vpop.permute.xlu1 %1578  ;;  %v1619_v37 = vpop.permute.xlu0 %1618  ;;  %v1717_v19 = vrot.slane %v1716_v21, 2  ;;  %v1724_v11 = vrot.slane %v1723_v6, 2  ;;  %v1663_v56 = vrot.slane %v1662_v38, 1  ;;  %v1729_v35 = vrot.slane %v1728_v8, 4 }
 0x39d   :  { %v1644_v58 = vmul.f32 %v1579_v40, %v2539_v52  ;;  %v1652_v42 = vmul.f32 %v1619_v37, %v2554_v53  ;;  %v1670_v15 = vrot.slane %v1669_v27, 1  ;;  %v1673_v30 = vrot.slane %v1672_v43, 4 }
 0x39e   :  { %v1718_v33 = vadd.f32 %v1717_v19, %v1716_v21  ;;  %v1725_v50 = vadd.f32 %v1724_v11, %v1723_v6  ;;  %v1664_v16 = vadd.f32 %v1663_v56, %v1662_v38  ;;  %v1730_v62 = vadd.f32 %v1729_v35, %v1728_v8 }
 0x39f   :  { %v1679_v5 = vsel %vm1657_vm9, %v1644_v58, 0.0  ;;  %v1735_v48 = vsel %vm1657_vm9, %v1652_v42, 0.0  ;;  %v1671_v9 = vadd.f32 %v1670_v15, %v1669_v27  ;;  %v1674_v45 = vadd.f32 %v1673_v30, %v1672_v43 }
 0x3a0   :  { %v1584_v31 = vpop.permute.xlu1 %1583  ;;  %v1624_v29 = vpop.permute.xlu0 %1623  ;;  %v1680_v60 = vrot.slane %v1679_v5, 4  ;;  %v1736_v13 = vrot.slane %v1735_v48, 4  ;;  %v1719_v10 = vrot.slane %v1718_v33, 1  ;;  %v1726_v41 = vrot.slane %v1725_v50, 1 }
 0x3a1   :  { %v1645_v51 = vmul.f32 %v1584_v31, %v2539_v52  ;;  %v1653_v39 = vmul.f32 %v1624_v29, %v2554_v53  ;;  %v1731_v49 = vrot.slane %v1730_v62, 2  ;;  %v2626_v38 = vsel %vm349_vm1, %v1671_v9, %v1664_v16 }
 0x3a2   :  { %v1681_v7 = vadd.f32 %v1680_v60, %v1679_v5  ;;  %v1737_v18 = vadd.f32 %v1736_v13, %v1735_v48  ;;  %v1675_v40 = vrot.slane %v1674_v45, 2  ;;  %v1720_v27 = vadd.f32 %v1719_v10, %v1718_v33 }
 0x3a3   :  { %v1686_v23 = vsel %vm1657_vm9, %v1645_v51, 0.0  ;;  %v1742_v26 = vsel %vm1657_vm9, %v1653_v39, 0.0  ;;  %v1727_v12 = vadd.f32 %v1726_v41, %v1725_v50  ;;  %v1732_v11 = vadd.f32 %v1731_v49, %v1730_v62 }
 0x3a4   :  { %v1687_v17 = vrot.slane %v1686_v23, 4  ;;  %v1589_v44 = vpop.permute.xlu1 %1588  ;;  %v1629_v63 = vpop.permute.xlu0 %1628  ;;  %v1743_v14 = vrot.slane %v1742_v26, 4  ;;  %v1682_v37 = vrot.slane %v1681_v7, 2  ;;  %v1738_v8 = vrot.slane %v1737_v18, 2 }
 0x3a5   :  { %v1646_v1 = vmul.f32 %v1589_v44, %v2539_v52  ;;  %v1654_v24 = vmul.f32 %v1629_v63, %v2554_v53  ;;  %v1676_v56 = vadd.f32 %v1675_v40, %v1674_v45  ;;  %v1733_v25 = vrot.slane %v1732_v11, 1 }
 0x3a6   :  { %v1744_v21 = vadd.f32 %v1743_v14, %v1742_v26  ;;  %v1688_v20 = vadd.f32 %v1687_v17, %v1686_v23  ;;  %v1683_v35 = vadd.f32 %v1682_v37, %v1681_v7  ;;  %v1739_v15 = vadd.f32 %v1738_v8, %v1737_v18 }
 0x3a7   :  { %v1693_v36 = vsel %vm1657_vm9, %v1646_v1, 0.0  ;;  %v1749_v6 = vsel %vm1657_vm9, %v1654_v24, 0.0  ;;  %v1677_v44 = vrot.slane %v1676_v56, 1  ;;  %v1734_v41 = vadd.f32 %v1733_v25, %v1732_v11 }
 0x3a8   :  { %v1594_v46 = vpop.permute.xlu1 %1593  ;;  %v1634_v0 = vpop.permute.xlu0 %1633  ;;  %v1694_v58 = vrot.slane %v1693_v36, 4  ;;  %v1750_v42 = vrot.slane %v1749_v6, 4  ;;  %v1745_v55 = vrot.slane %v1744_v21, 2  ;;  %v1689_v5 = vrot.slane %v1688_v20, 2 }
 0x3a9   :  { %v1647_v19 = vmul.f32 %v1594_v46, %v2539_v52  ;;  %v1655_v43 = vmul.f32 %v1634_v0, %v2554_v53  ;;  %v1740_v63 = vrot.slane %v1739_v15, 1  ;;  %v1684_v7 = vrot.slane %v1683_v35, 1 }
 0x3aa   :  { %v1695_v48 = vadd.f32 %v1694_v58, %v1693_v36  ;;  %v1751_v57 = vadd.f32 %v1750_v42, %v1749_v6  ;;  %v1746_v54 = vadd.f32 %v1745_v55, %v1744_v21  ;;  %v1690_v61 = vadd.f32 %v1689_v5, %v1688_v20 }
 0x3ab   :  { %v1700_v31 = vsel %vm1657_vm9, %v1647_v19, 0.0  ;;  %v1756_v29 = vsel %vm1657_vm9, %v1655_v43, 0.0  ;;  %v1678_v36 = vadd.f32 %v1677_v44, %v1676_v56  ;;  %v1741_v6 = vadd.f32 %v1740_v63, %v1739_v15 }
 0x3ac   :  { %v1639_v47 = vpop.permute.xlu1 %1638  ;;  %v1599_v34 = vpop.permute.xlu0 %1598  ;;  %v1696_v30 = vrot.slane %v1695_v48, 2  ;;  %v1752_v60 = vrot.slane %v1751_v57, 2  ;;  %v1701_v51 = vrot.slane %v1700_v31, 4  ;;  %v1757_v33 = vrot.slane %v1756_v29, 4 }
 0x3ad   :  { %v1656_v13 = vmul.f32 %v1639_v47, %v2554_v53  ;;  %v1648_v39 = vmul.f32 %v1599_v34, %v2539_v52  ;;  %v1747_v14 = vrot.slane %v1746_v54, 1  ;;  %v1691_v18 = vrot.slane %v1690_v61, 1 }
 0x3ae   :  { %v1753_v50 = vadd.f32 %v1752_v60, %v1751_v57  ;;  %v1702_v23 = vadd.f32 %v1701_v51, %v1700_v31  ;;  %v1697_v16 = vadd.f32 %v1696_v30, %v1695_v48  ;;  %v1758_v62 = vadd.f32 %v1757_v33, %v1756_v29 }
 0x3af   :  { %v1763_v17 = vsel %vm1657_vm9, %v1656_v13, 0.0  ;;  %v1707_v26 = vsel %vm1657_vm9, %v1648_v39, 0.0  ;;  %v1685_v40 = vadd.f32 %v1684_v7, %v1683_v35  ;;  %v1748_v37 = vadd.f32 %v1747_v14, %v1746_v54 }
 0x3b0   :  { %v1703_v9 = vrot.slane %v1702_v23, 2  ;;  %v1764_v45 = vrot.slane %v1763_v17, 4  ;;  %v1759_v10 = vrot.slane %v1758_v62, 2  ;;  %v1708_v53 = vrot.slane %v1707_v26, 4 }
 0x3b1   :  { %v1754_v52 = vrot.slane %v1753_v50, 1  ;;  %v1698_v21 = vrot.slane %v1697_v16, 1  ;;  %v1825_v42 = vsel %vm349_vm1, %v1727_v12, %v1720_v27  ;;  %v1692_v55 = vadd.f32 %v1691_v18, %v1690_v61 }
 0x3b2   :  { %v1704_v1 = vadd.f32 %v1703_v9, %v1702_v23  ;;  %v1765_v24 = vadd.f32 %v1764_v45, %v1763_v17  ;;  %v1760_v49 = vadd.f32 %v1759_v10, %v1758_v62  ;;  %v1709_v20 = vadd.f32 %v1708_v53, %v1707_v26 }
 0x3b3   :  { %v1755_v19 = vadd.f32 %v1754_v52, %v1753_v50  ;;  %v1826_v5 = vsel %vm351_vm2, %v1734_v41, %v1825_v42  ;;  %v1699_v48 = vadd.f32 %v1698_v21, %v1697_v16  ;;  %v1819_v47 = vsel %vm351_vm2, %v1678_v36, %v2626_v38 }
 0x3b4   :  { %v1705_v46 = vrot.slane %v1704_v1, 1  ;;  %v1766_v0 = vrot.slane %v1765_v24, 2  ;;  %v1761_v8 = vrot.slane %v1760_v49, 1  ;;  %v1710_v58 = vrot.slane %v1709_v20, 2 }
 0x3b5   :  { %v1827_v34 = vsel %vm353_vm3, %v1741_v6, %v1826_v5  ;;  %v1798_v31 = vsel %vm359_vm6, %v2623_v28, %v2619_v3  ;;  %v1820_v27 = vsel %vm353_vm3, %v1685_v40, %v1819_v47  ;;  %v903_v15 = vadd.f32 %v902_v2, %v2579_v4 }
 0x3b6   :  { %v1767_v43 = vadd.f32 %v1766_v0, %v1765_v24  ;;  %v1762_v11 = vadd.f32 %v1761_v8, %v1760_v49  ;;  %v1711_v57 = vadd.f32 %v1710_v58, %v1709_v20  ;;  %v1706_v56 = vadd.f32 %v1705_v46, %v1704_v1 }
 0x3b7   :  { %v1828_v12 = vsel %vm355_vm4, %v1748_v37, %v1827_v34  ;;  %v1821_v30 = vsel %vm355_vm4, %v1692_v55, %v1820_v27  ;;  %v1791_v3 = vsel %vm359_vm6, %v903_v15, %v2594_v59  ;;  %v1799_v28 = vsel %vm361_vm7, %v2616_v22, %v1798_v31 }
 0x3b8   :  { %v1768_v35 = vrot.slane %v1767_v43, 1  ;;  %v1712_v29 = vrot.slane %v1711_v57, 1  ;;  %v1829_v38 = vsel %vm357_vm5, %v1755_v19, %v1828_v12  ;;  %v1822_v51 = vsel %vm357_vm5, %v1699_v48, %v1821_v30 }
 0x3b9   :  { %v1830_v54 = vsel %vm359_vm6, %v1762_v11, %v1829_v38  ;;  %v1823_v13 = vsel %vm359_vm6, %v1706_v56, %v1822_v51  ;;  %v1792_v2 = vsel %vm361_vm7, %v2598_v32, %v1791_v3 }
 0x3ba   :  { %v1769_v60 = vadd.f32 %v1768_v35, %v1767_v43  ;;  %v1713_v33 = vadd.f32 %v1712_v29, %v1711_v57 }
 0x3bc   :  { %v1831_v4 = vsel %vm361_vm7, %v1769_v60, %v1830_v54  ;;  %v1824_v25 = vsel %vm361_vm7, %v1713_v33, %v1823_v13 }
 0x3bd   :  { %v1835_v39 = vsel %vm218_vm0, %v1799_v28, %v1831_v4  ;;  %v1834_v59 = vsel %vm218_vm0, %v1792_v2, %v1824_v25 }
 0x3be   :  { %1837 = vst.msk [vmem:[%s2675_s3 + $0x8] sm:$0xff] %vm372_vm8, %v1835_v39  ;;  %1836 = vst.msk [vmem:[%s2675_s3] sm:$0xff] %vm372_vm8, %v1834_v59 }

</bundles_post_ra>
